<compile_context>
chip_gen: v6e
topology: v6e:2x2x1
jax: 0.10.0
libtpu: 0.0.40
codegen_flags: <defaults>
</compile_context>

<pallas_src>
import numpy as np
import jax
import jax.numpy as jnp
from jax import lax
from jax.experimental import pallas as pl
from jax.experimental.pallas import tpu as pltpu


_INT32_SIGN_MASK = np.int32(0x7FFFFFFF)
_KNOCKED_OUT_KEY = np.int32(-2 ** 31)


# ------------------------------ fused kernel ------------------------------- #

def _make_decode_kernel(Bb, S, Lp, Q, C, K, P, W, pc_range, post_center_range,
                        pred_absolute_points):
    """Build the fused decode kernel for one (Bb, S, Lp)/(Bb, Q, W) block."""
    D = 2 * P
    sx = float(pc_range[3] - pc_range[0])
    ox = float(pc_range[0])
    sy = float(pc_range[4] - pc_range[1])
    oy = float(pc_range[1])
    pcr = [float(v) for v in post_center_range]
    inv_c = float(1.0 / C)
    big_pos = np.int32(S * Lp)
    unroll = 8 if K % 8 == 0 else (4 if K % 4 == 0 else (2 if K % 2 == 0 else 1))

    def kernel(logits_ref, rhs_ref, out_ref):
        # ---- exact, order-preserving int32 sort keys (sigmoid is monotonic) -
        raw = logits_ref[...]                                    # (Bb, S, Lp) f32
        bits = pltpu.bitcast(raw, jnp.int32)
        keys0 = jnp.where(bits >= 0, bits, bits ^ _INT32_SIGN_MASK)

        s_iota = lax.broadcasted_iota(jnp.int32, (Bb, S, Lp), 1)
        l_iota = lax.broadcasted_iota(jnp.int32, (Bb, S, Lp), 2)
        pos = s_iota * Lp + l_iota                               # flat idx q*C + c
        k_iota = lax.broadcasted_iota(jnp.int32, (Bb, K, 1), 1)

        # ---- top-K: fori_loop carrying two tiny (Bb, K, 1) accumulators -----
        def body(k, carry):
            keys, top_key, top_idx = carry
            m = jnp.max(jnp.max(keys, axis=2, keepdims=True), axis=1,
                        keepdims=True)                           # (Bb, 1, 1)
            cand = jnp.where(keys == m, pos, big_pos)
            idx = jnp.min(jnp.min(cand, axis=2, keepdims=True), axis=1,
                          keepdims=True)                         # (Bb, 1, 1)
            keys = jnp.where(pos == idx, _KNOCKED_OUT_KEY, keys)  # knock out winner
            sel = k_iota == k
            top_key = jnp.where(sel, m, top_key)
            top_idx = jnp.where(sel, idx, top_idx)
            return keys, top_key, top_idx

        init = (keys0,
                jnp.full((Bb, K, 1), _KNOCKED_OUT_KEY, jnp.int32),
                jnp.zeros((Bb, K, 1), jnp.int32))
        _, top_key, top_idx = lax.fori_loop(0, K, body, init, unroll=unroll)

        # ---- scores (exact logit recovered from the key), labels, bbox idx --
        logit_bits = jnp.where(top_key >= 0, top_key, top_key ^ _INT32_SIGN_MASK)
        scores = jax.nn.sigmoid(pltpu.bitcast(logit_bits, jnp.float32))  # (Bb,K,1)

        # exact idx // C: float estimate + integer correction (no vector idiv)
        q0 = jnp.floor((top_idx.astype(jnp.float32) + 0.5) * inv_c).astype(jnp.int32)
        rem = top_idx - q0 * C
        bbox_index = jnp.where(rem < 0, q0 - 1, jnp.where(rem >= C, q0 + 1, q0))
        labels = top_idx - bbox_index * C                        # (Bb, K, 1) i32

        # ---- single one-hot gather over the slab-layout RHS (MXU) -----------
        q_iota = lax.broadcasted_iota(jnp.int32, (Bb, K, Q), 2)
        onehot = (bbox_index == q_iota).astype(jnp.float32)      # exact 0/1
        g = jnp.einsum("bkq,bqw->bkw", onehot, rhs_ref[...],
                       preferred_element_type=jnp.float32)       # (Bb, K, W)

        col = lax.broadcasted_iota(jnp.int32, (Bb, K, W), 2)
        cx = g[..., 0:1]
        cy = g[..., 1:2]
        if pred_absolute_points:
            vals = g
            x1, y1, x2, y2 = cx, cy, g[..., 2:3], g[..., 3:4]
        else:
            w = g[..., 2:3]
            h = g[..., 3:4]
            x1 = (cx - 0.5 * w) * sx + ox
            y1 = (cy - 0.5 * h) * sy + oy
            x2 = (cx + 0.5 * w) * sx + ox
            y2 = (cy + 0.5 * h) * sy + oy
            # lane-dense point denormalization over the whole slab
            even = (col & 1) == 0
            pts_zone = (col >= 8) & (col < 8 + D)
            denorm = g * jnp.where(even, sx, sy) + jnp.where(even, ox, oy)
            vals = jnp.where(pts_zone, denorm, g)
            # blend xyxy box columns in place (cols 0..3)
            vals = jnp.where(col == 0, x1, vals)
            vals = jnp.where(col == 1, y1, vals)
            vals = jnp.where(col == 2, x2, vals)
            vals = jnp.where(col == 3, y2, vals)

        # ---- post_center_range mask (no cross-lane reduce needed) -----------
        inside = ((x1 >= pcr[0]) & (y1 >= pcr[1]) & (x2 >= pcr[2]) & (y2 >= pcr[3]) &
                  (x1 <= pcr[4]) & (y1 <= pcr[5]) & (x2 <= pcr[6]) & (y2 <= pcr[7]))
        mask = inside.astype(jnp.float32)                        # (Bb, K, 1)

        # ---- blend score / label / mask columns; single full-tile store -----
        vals = jnp.where(col == 4, scores, vals)
        vals = jnp.where(col == 5, labels.astype(jnp.float32), vals)
        vals = jnp.where(col == 6, mask, vals)
        out_ref[...] = vals

    return kernel


def _dual_core_device() -> bool:
    """True on chips whose JAX device exposes two TensorCores (megacore)."""
    try:
        kind = jax.devices()[0].device_kind.lower()
    except Exception:
        return False
    return any(tag in kind for tag in ("v7", "7x", "v4", "v5p"))


# ------------------------------ module wrapper ------------------------------ #

class MapTRPostProcess:
    """JAX/Pallas re-implementation of MapTRPostProcess (MapTRNMSFreeCoder decode)."""

    def __init__(self, pc_range=None, post_center_range=None, max_num=100,
                 score_threshold=None, num_classes=10, pred_absolute_points=False):
        self.pc_range = pc_range
        self.post_center_range = post_center_range
        self.max_num = max_num
        self.score_threshold = score_threshold
        self.num_classes = num_classes
        self.pred_absolute_points = pred_absolute_points
        self._fn_cache = {}

    def _get_decode_fn(self, B, Q, C, P):
        key = (B, Q, C, P)
        if key in self._fn_cache:
            return self._fn_cache[key]
        assert self.post_center_range is not None, (
            "only post_center_range is not None is supported (as in reference)")
        K = self.max_num
        QC = Q * C
        assert K <= QC, "max_num must not exceed num_query * num_classes"
        D = 2 * P
        W = ((8 + D + 127) // 128) * 128             # lane-dense slab width
        # sublane-pack the flattened logits: (B, QC) -> (B, S, Lp)
        S = max(1, min(8, QC // 128))
        Lp = -(-QC // S)
        pad = S * Lp - QC

        # One TensorCore: a single grid step already overlaps all batches in
        # the vector unit; two TensorCores (v7x / megacore): split the batch.
        if _dual_core_device() and B >= 2 and B % 2 == 0:
            G, Bb, sem = 2, B // 2, "parallel"
        else:
            G, Bb, sem = 1, B, "arbitrary"

        kernel = _make_decode_kernel(
            Bb, S, Lp, Q, C, K, P, W, self.pc_range, self.post_center_range,
            self.pred_absolute_points)
        call = pl.pallas_call(
            kernel,
            out_shape=jax.ShapeDtypeStruct((B, K, W), jnp.float32),
            grid=(G,),
            in_specs=[
                pl.BlockSpec((Bb, S, Lp), lambda i: (i, 0, 0)),
                pl.BlockSpec((Bb, Q, W), lambda i: (i, 0, 0)),
            ],
            out_specs=pl.BlockSpec((Bb, K, W), lambda i: (i, 0, 0)),
            compiler_params=pltpu.CompilerParams(dimension_semantics=(sem,)),
        )

        fmin = float(np.finfo(np.float32).min)

        def decode(cls, bbox, pts):
            # Layout plumbing only: pad/reshape logits, build the slab RHS.
            flat = cls.reshape(B, QC)
            if pad:
                flat = jnp.concatenate(
                    [flat, jnp.full((B, pad), fmin, jnp.float32)], axis=-1)
            logits3 = flat.reshape(B, S, Lp)
            pieces = [bbox, jnp.zeros((B, Q, 4), jnp.float32), pts.reshape(B, Q, D)]
            if W - 8 - D > 0:
                pieces.append(jnp.zeros((B, Q, W - 8 - D), jnp.float32))
            rhs = jnp.concatenate(pieces, axis=-1)                # (B, Q, W)
            return call(logits3, rhs)

        fn = jax.jit(decode)
        self._fn_cache[key] = fn
        return fn

    def decode_device(self, preds_dicts):
        """Run the fused decode kernel; returns the packed (B, K, W) slab."""
        preds_dicts = dict(preds_dicts)
        for k in ("one2many_outs", "pv_seg", "dense_depth"):
            preds_dicts.pop(k, None)
        # `.float()` equivalent: cast to float32.
        cls = jnp.asarray(preds_dicts["all_cls_scores"][-1], jnp.float32)   # (B,Q,C)
        bbox = jnp.asarray(preds_dicts["all_bbox_preds"][-1], jnp.float32)  # (B,Q,4)
        pts = jnp.asarray(preds_dicts["all_pts_preds"][-1], jnp.float32)    # (B,Q,P,2)

        B, Q, C = cls.shape
        P = pts.shape[2]
        assert C == self.num_classes, (
            "num_classes must equal the class dim of all_cls_scores "
            f"(num_classes={self.num_classes}, C={C})")
        fn = self._get_decode_fn(B, Q, C, P)
        return fn(cls, bbox, pts)

    @staticmethod
    def _unpack_slab(slab_np, P):
        B, K, _ = slab_np.shape
        boxes = slab_np[:, :, 0:4]
        scores = slab_np[:, :, 4]
        labels = slab_np[:, :, 5].astype(np.int64)
        mask = slab_np[:, :, 6] > 0.5
        pts = slab_np[:, :, 8:8 + 2 * P].reshape(B, K, P, 2)
        return boxes, scores, labels, pts, mask

    def forward(self, preds_dicts, img_metas=None):
        P = int(np.shape(preds_dicts["all_pts_preds"])[-2])
        slab = self.decode_device(preds_dicts)
        slab_np = np.asarray(jax.block_until_ready(slab))
        boxes_np, scores_np, labels_np, pts_np, mask_np = self._unpack_slab(slab_np, P)

        # Host-side dynamic (variable-length) filtering, mirrors torch exactly.
        # TODO(synk): ragged per-sample outputs have no fixed-shape Pallas
        # equivalent; this part intentionally stays on the host.
        bbox_results = []
        for i in range(boxes_np.shape[0]):
            m = mask_np[i].copy()
            sc = scores_np[i]
            if self.score_threshold is not None:
                thresh_mask = sc > self.score_threshold
                tmp_score = self.score_threshold
                while thresh_mask.sum() == 0:
                    tmp_score *= 0.9
                    if tmp_score < 0.01:
                        thresh_mask = sc > -1
                        break
                    thresh_mask = sc >= tmp_score
                if self.score_threshold:
                    m = m & thresh_mask
            bbox_results.append({
                "boxes_3d": boxes_np[i][m],
                "scores_3d": sc[m],
                "labels_3d": labels_np[i][m],
                "pts_3d": pts_np[i][m],
            })
        return bbox_results

    __call__ = forward


# --------------------------- numpy reference (spec) -------------------------- #

def _reference_decode(cls, bbox, pts, pc_range, post_center_range, K, num_classes):
    cls = np.asarray(cls, np.float32)
    bbox = np.asarray(bbox, np.float32)
    pts = np.asarray(pts, np.float32)
    B, Q, C = cls.shape
    P = pts.shape[2]
    sx = pc_range[3] - pc_range[0]
    ox = pc_range[0]
    sy = pc_range[4] - pc_range[1]
    oy = pc_range[1]
    pcr = np.asarray(post_center_range, np.float32)

    boxes_o = np.zeros((B, K, 4), np.float32)
    scores_o = np.zeros((B, K), np.float32)
    labels_o = np.zeros((B, K), np.int64)
    pts_o = np.zeros((B, K, P, 2), np.float32)
    mask_o = np.zeros((B, K), bool)
    for b in range(B):
        flat = cls[b].reshape(-1)
        order = np.argsort(-flat, kind="stable")[:K]
        scores_o[b] = 1.0 / (1.0 + np.exp(-flat[order]))
        labels_o[b] = order % num_classes
        bidx = order // num_classes
        bb = bbox[b][bidx]
        pp = pts[b][bidx]
        x1 = (bb[:, 0] - 0.5 * bb[:, 2]) * sx + ox
        y1 = (bb[:, 1] - 0.5 * bb[:, 3]) * sy + oy
        x2 = (bb[:, 0] + 0.5 * bb[:, 2]) * sx + ox
        y2 = (bb[:, 1] + 0.5 * bb[:, 3]) * sy + oy
        xyxy = np.stack([x1, y1, x2, y2], axis=-1)
        boxes_o[b] = xyxy
        pts_o[b, :, :, 0] = pp[:, :, 0] * sx + ox
        pts_o[b, :, :, 1] = pp[:, :, 1] * sy + oy
        mask_o[b] = np.all(xyxy >= pcr[:4], axis=-1) & np.all(xyxy <= pcr[4:], axis=-1)
    return boxes_o, scores_o, labels_o, pts_o, mask_o


# ----------------------------------- main ----------------------------------- #

if __name__ == "__main__":
    key = jax.random.PRNGKey(0)
    L, B, Q, C, P = 2, 2, 32, 4, 8     # decoder layers, batch, queries, classes, pts
    K = 8                              # max_num

    k1, k2, k3 = jax.random.split(key, 3)
    all_cls_scores = jax.random.normal(k1, (L, B, Q, C), dtype=jnp.float32)
    all_bbox_preds = jax.random.uniform(k2, (L, B, Q, 4), dtype=jnp.float32)
    all_pts_preds = jax.random.uniform(k3, (L, B, Q, P, 2), dtype=jnp.float32)

    pc_range = [-15.0, -30.0, -2.0, 15.0, 30.0, 2.0]
    post_center_range = [-20.0, -35.0, -20.0, -35.0, 20.0, 35.0, 20.0, 35.0]

    model = MapTRPostProcess(
        pc_range=pc_range,
        post_center_range=post_center_range,
        max_num=K,
        score_threshold=0.3,
        num_classes=C,
        pred_absolute_points=False,
    )

    preds_dicts = {
        "all_cls_scores": all_cls_scores,
        "all_bbox_preds": all_bbox_preds,
        "all_pts_preds": all_pts_preds,
        "one2many_outs": None,
    }

    # Run the fused kernel once and block on the result.
    slab = model.decode_device(dict(preds_dicts))
    jax.block_until_ready(slab)

    # Verify against a plain-numpy reference of the torch decode.
    boxes_k, scores_k, labels_k, pts_k, mask_k = MapTRPostProcess._unpack_slab(
        np.asarray(slab), P)
    boxes_r, scores_r, labels_r, pts_r, mask_r = _reference_decode(
        all_cls_scores[-1], all_bbox_preds[-1], all_pts_preds[-1],
        pc_range, post_center_range, K, C)
    np.testing.assert_allclose(boxes_k, boxes_r, rtol=1e-4, atol=1e-3)
    np.testing.assert_allclose(scores_k, scores_r, rtol=1e-4, atol=1e-5)
    np.testing.assert_array_equal(labels_k, labels_r)
    np.testing.assert_allclose(pts_k, pts_r, rtol=1e-4, atol=1e-3)
    np.testing.assert_array_equal(mask_k, mask_r)

    # Full forward (host-side variable-length filtering), structural checks.
    results = model.forward(dict(preds_dicts), img_metas=None)
    assert len(results) == B
    for r in results:
        assert r["boxes_3d"].shape[-1] == 4
        assert r["pts_3d"].shape[-2:] == (P, 2)

    print("KERNEL_OK")
</pallas_src>

<mosaic_0001>
module attributes {stable_mosaic.version = 11 : i64} {
  func.func @kernel(%arg0: i32, %arg1: memref<2x1x128xf32, #tpu.memory_space<vmem>>, %arg2: memref<2x32x128xf32, #tpu.memory_space<vmem>>, %arg3: memref<2x8x128xf32, #tpu.memory_space<vmem>>) attributes {dimension_semantics = [#tpu.dimension_semantics<arbitrary>], iteration_bounds = array<i64: 1>, scalar_prefetch = 0 : i64, scratch_operands = 0 : i64, tpu.core_type = #tpu.core_type<tc>, window_params = [{transform_indices = @transform_0, window_bounds = array<i64: 2, 1, 128>}, {transform_indices = @transform_1, window_bounds = array<i64: 2, 32, 128>}, {transform_indices = @transform_2, window_bounds = array<i64: 2, 8, 128>}]} {
    %c0 = arith.constant 0 : index
    %c0_0 = arith.constant 0 : index
    %c0_1 = arith.constant 0 : index
    %0 = vector.load %arg1[%c0, %c0_0, %c0_1] : memref<2x1x128xf32, #tpu.memory_space<vmem>>, vector<2x1x128xf32>
    %1 = tpu.bitcast %0 : vector<2x1x128xf32> -> vector<2x1x128xi32>
    %c0_i32 = arith.constant 0 : i32
    %2 = vector.broadcast %c0_i32 : i32 to vector<2x1x128xi32>
    %3 = arith.cmpi sge, %1, %2 : vector<2x1x128xi32>
    %c2147483647_i32 = arith.constant 2147483647 : i32
    %4 = vector.broadcast %c2147483647_i32 : i32 to vector<2x1x128xi32>
    %5 = arith.xori %1, %4 : vector<2x1x128xi32>
    %6 = arith.select %3, %1, %5 : vector<2x1x128xi1>, vector<2x1x128xi32>
    %7 = tpu.iota {dimensions = array<i32: 1>} : vector<2x1x128xi32>
    %8 = tpu.iota {dimensions = array<i32: 2>} : vector<2x1x128xi32>
    %c128_i32 = arith.constant 128 : i32
    %9 = vector.broadcast %c128_i32 : i32 to vector<2x1x128xi32>
    %10 = arith.muli %7, %9 : vector<2x1x128xi32>
    %11 = arith.addi %10, %8 : vector<2x1x128xi32>
    %12 = tpu.iota {dimensions = array<i32: 1>} : vector<2x8x1xi32>
    %c-2147483648_i32 = arith.constant -2147483648 : i32
    %13 = vector.broadcast %c-2147483648_i32 : i32 to vector<2x8x1xi32>
    %c0_i32_2 = arith.constant 0 : i32
    %14 = vector.broadcast %c0_i32_2 : i32 to vector<2x8x1xi32>
    %c0_i32_3 = arith.constant 0 : i32
    %cst = arith.constant dense<-2147483648> : vector<2x1xi32>
    %15 = vector.multi_reduction <maxsi>, %6, %cst [2] : vector<2x1x128xi32> to vector<2x1xi32>
    %16 = vector.shape_cast %15 : vector<2x1xi32> to vector<2x1x1xi32>
    %cst_4 = arith.constant dense<-2147483648> : vector<2x1xi32>
    %17 = vector.multi_reduction <maxsi>, %16, %cst_4 [1] : vector<2x1x1xi32> to vector<2x1xi32>
    %18 = vector.shape_cast %17 : vector<2x1xi32> to vector<2x1x1xi32>
    %19 = vector.broadcast %18 : vector<2x1x1xi32> to vector<2x1x128xi32>
    %20 = arith.cmpi eq, %6, %19 : vector<2x1x128xi32>
    %c128_i32_5 = arith.constant 128 : i32
    %21 = vector.broadcast %c128_i32_5 : i32 to vector<2x1x128xi32>
    %22 = arith.select %20, %11, %21 : vector<2x1x128xi1>, vector<2x1x128xi32>
    %cst_6 = arith.constant dense<2147483647> : vector<2x1xi32>
    %23 = vector.multi_reduction <minsi>, %22, %cst_6 [2] : vector<2x1x128xi32> to vector<2x1xi32>
    %24 = vector.shape_cast %23 : vector<2x1xi32> to vector<2x1x1xi32>
    %cst_7 = arith.constant dense<2147483647> : vector<2x1xi32>
    %25 = vector.multi_reduction <minsi>, %24, %cst_7 [1] : vector<2x1x1xi32> to vector<2x1xi32>
    %26 = vector.shape_cast %25 : vector<2x1xi32> to vector<2x1x1xi32>
    %27 = vector.broadcast %26 : vector<2x1x1xi32> to vector<2x1x128xi32>
    %28 = arith.cmpi eq, %11, %27 : vector<2x1x128xi32>
    %c-2147483648_i32_8 = arith.constant -2147483648 : i32
    %29 = vector.broadcast %c-2147483648_i32_8 : i32 to vector<2x1x128xi32>
    %30 = arith.select %28, %29, %6 : vector<2x1x128xi1>, vector<2x1x128xi32>
    %31 = vector.broadcast %c0_i32_3 : i32 to vector<2x8x1xi32>
    %32 = arith.cmpi eq, %12, %31 : vector<2x8x1xi32>
    %33 = vector.shape_cast %18 : vector<2x1x1xi32> to vector<2x1x1xi32>
    %34 = vector.broadcast %33 : vector<2x1x1xi32> to vector<2x8x1xi32>
    %35 = arith.select %32, %34, %13 : vector<2x8x1xi1>, vector<2x8x1xi32>
    %36 = vector.shape_cast %26 : vector<2x1x1xi32> to vector<2x1x1xi32>
    %37 = vector.broadcast %36 : vector<2x1x1xi32> to vector<2x8x1xi32>
    %38 = arith.select %32, %37, %14 : vector<2x8x1xi1>, vector<2x8x1xi32>
    %c1_i32 = arith.constant 1 : i32
    %cst_9 = arith.constant dense<-2147483648> : vector<2x1xi32>
    %39 = vector.multi_reduction <maxsi>, %30, %cst_9 [2] : vector<2x1x128xi32> to vector<2x1xi32>
    %40 = vector.shape_cast %39 : vector<2x1xi32> to vector<2x1x1xi32>
    %cst_10 = arith.constant dense<-2147483648> : vector<2x1xi32>
    %41 = vector.multi_reduction <maxsi>, %40, %cst_10 [1] : vector<2x1x1xi32> to vector<2x1xi32>
    %42 = vector.shape_cast %41 : vector<2x1xi32> to vector<2x1x1xi32>
    %43 = vector.broadcast %42 : vector<2x1x1xi32> to vector<2x1x128xi32>
    %44 = arith.cmpi eq, %30, %43 : vector<2x1x128xi32>
    %c128_i32_11 = arith.constant 128 : i32
    %45 = vector.broadcast %c128_i32_11 : i32 to vector<2x1x128xi32>
    %46 = arith.select %44, %11, %45 : vector<2x1x128xi1>, vector<2x1x128xi32>
    %cst_12 = arith.constant dense<2147483647> : vector<2x1xi32>
    %47 = vector.multi_reduction <minsi>, %46, %cst_12 [2] : vector<2x1x128xi32> to vector<2x1xi32>
    %48 = vector.shape_cast %47 : vector<2x1xi32> to vector<2x1x1xi32>
    %cst_13 = arith.constant dense<2147483647> : vector<2x1xi32>
    %49 = vector.multi_reduction <minsi>, %48, %cst_13 [1] : vector<2x1x1xi32> to vector<2x1xi32>
    %50 = vector.shape_cast %49 : vector<2x1xi32> to vector<2x1x1xi32>
    %51 = vector.broadcast %50 : vector<2x1x1xi32> to vector<2x1x128xi32>
    %52 = arith.cmpi eq, %11, %51 : vector<2x1x128xi32>
    %c-2147483648_i32_14 = arith.constant -2147483648 : i32
    %53 = vector.broadcast %c-2147483648_i32_14 : i32 to vector<2x1x128xi32>
    %54 = arith.select %52, %53, %30 : vector<2x1x128xi1>, vector<2x1x128xi32>
    %55 = vector.broadcast %c1_i32 : i32 to vector<2x8x1xi32>
    %56 = arith.cmpi eq, %12, %55 : vector<2x8x1xi32>
    %57 = vector.shape_cast %42 : vector<2x1x1xi32> to vector<2x1x1xi32>
    %58 = vector.broadcast %57 : vector<2x1x1xi32> to vector<2x8x1xi32>
    %59 = arith.select %56, %58, %35 : vector<2x8x1xi1>, vector<2x8x1xi32>
    %60 = vector.shape_cast %50 : vector<2x1x1xi32> to vector<2x1x1xi32>
    %61 = vector.broadcast %60 : vector<2x1x1xi32> to vector<2x8x1xi32>
    %62 = arith.select %56, %61, %38 : vector<2x8x1xi1>, vector<2x8x1xi32>
    %c2_i32 = arith.constant 2 : i32
    %cst_15 = arith.constant dense<-2147483648> : vector<2x1xi32>
    %63 = vector.multi_reduction <maxsi>, %54, %cst_15 [2] : vector<2x1x128xi32> to vector<2x1xi32>
    %64 = vector.shape_cast %63 : vector<2x1xi32> to vector<2x1x1xi32>
    %cst_16 = arith.constant dense<-2147483648> : vector<2x1xi32>
    %65 = vector.multi_reduction <maxsi>, %64, %cst_16 [1] : vector<2x1x1xi32> to vector<2x1xi32>
    %66 = vector.shape_cast %65 : vector<2x1xi32> to vector<2x1x1xi32>
    %67 = vector.broadcast %66 : vector<2x1x1xi32> to vector<2x1x128xi32>
    %68 = arith.cmpi eq, %54, %67 : vector<2x1x128xi32>
    %c128_i32_17 = arith.constant 128 : i32
    %69 = vector.broadcast %c128_i32_17 : i32 to vector<2x1x128xi32>
    %70 = arith.select %68, %11, %69 : vector<2x1x128xi1>, vector<2x1x128xi32>
    %cst_18 = arith.constant dense<2147483647> : vector<2x1xi32>
    %71 = vector.multi_reduction <minsi>, %70, %cst_18 [2] : vector<2x1x128xi32> to vector<2x1xi32>
    %72 = vector.shape_cast %71 : vector<2x1xi32> to vector<2x1x1xi32>
    %cst_19 = arith.constant dense<2147483647> : vector<2x1xi32>
    %73 = vector.multi_reduction <minsi>, %72, %cst_19 [1] : vector<2x1x1xi32> to vector<2x1xi32>
    %74 = vector.shape_cast %73 : vector<2x1xi32> to vector<2x1x1xi32>
    %75 = vector.broadcast %74 : vector<2x1x1xi32> to vector<2x1x128xi32>
    %76 = arith.cmpi eq, %11, %75 : vector<2x1x128xi32>
    %c-2147483648_i32_20 = arith.constant -2147483648 : i32
    %77 = vector.broadcast %c-2147483648_i32_20 : i32 to vector<2x1x128xi32>
    %78 = arith.select %76, %77, %54 : vector<2x1x128xi1>, vector<2x1x128xi32>
    %79 = vector.broadcast %c2_i32 : i32 to vector<2x8x1xi32>
    %80 = arith.cmpi eq, %12, %79 : vector<2x8x1xi32>
    %81 = vector.shape_cast %66 : vector<2x1x1xi32> to vector<2x1x1xi32>
    %82 = vector.broadcast %81 : vector<2x1x1xi32> to vector<2x8x1xi32>
    %83 = arith.select %80, %82, %59 : vector<2x8x1xi1>, vector<2x8x1xi32>
    %84 = vector.shape_cast %74 : vector<2x1x1xi32> to vector<2x1x1xi32>
    %85 = vector.broadcast %84 : vector<2x1x1xi32> to vector<2x8x1xi32>
    %86 = arith.select %80, %85, %62 : vector<2x8x1xi1>, vector<2x8x1xi32>
    %c3_i32 = arith.constant 3 : i32
    %cst_21 = arith.constant dense<-2147483648> : vector<2x1xi32>
    %87 = vector.multi_reduction <maxsi>, %78, %cst_21 [2] : vector<2x1x128xi32> to vector<2x1xi32>
    %88 = vector.shape_cast %87 : vector<2x1xi32> to vector<2x1x1xi32>
    %cst_22 = arith.constant dense<-2147483648> : vector<2x1xi32>
    %89 = vector.multi_reduction <maxsi>, %88, %cst_22 [1] : vector<2x1x1xi32> to vector<2x1xi32>
    %90 = vector.shape_cast %89 : vector<2x1xi32> to vector<2x1x1xi32>
    %91 = vector.broadcast %90 : vector<2x1x1xi32> to vector<2x1x128xi32>
    %92 = arith.cmpi eq, %78, %91 : vector<2x1x128xi32>
    %c128_i32_23 = arith.constant 128 : i32
    %93 = vector.broadcast %c128_i32_23 : i32 to vector<2x1x128xi32>
    %94 = arith.select %92, %11, %93 : vector<2x1x128xi1>, vector<2x1x128xi32>
    %cst_24 = arith.constant dense<2147483647> : vector<2x1xi32>
    %95 = vector.multi_reduction <minsi>, %94, %cst_24 [2] : vector<2x1x128xi32> to vector<2x1xi32>
    %96 = vector.shape_cast %95 : vector<2x1xi32> to vector<2x1x1xi32>
    %cst_25 = arith.constant dense<2147483647> : vector<2x1xi32>
    %97 = vector.multi_reduction <minsi>, %96, %cst_25 [1] : vector<2x1x1xi32> to vector<2x1xi32>
    %98 = vector.shape_cast %97 : vector<2x1xi32> to vector<2x1x1xi32>
    %99 = vector.broadcast %98 : vector<2x1x1xi32> to vector<2x1x128xi32>
    %100 = arith.cmpi eq, %11, %99 : vector<2x1x128xi32>
    %c-2147483648_i32_26 = arith.constant -2147483648 : i32
    %101 = vector.broadcast %c-2147483648_i32_26 : i32 to vector<2x1x128xi32>
    %102 = arith.select %100, %101, %78 : vector<2x1x128xi1>, vector<2x1x128xi32>
    %103 = vector.broadcast %c3_i32 : i32 to vector<2x8x1xi32>
    %104 = arith.cmpi eq, %12, %103 : vector<2x8x1xi32>
    %105 = vector.shape_cast %90 : vector<2x1x1xi32> to vector<2x1x1xi32>
    %106 = vector.broadcast %105 : vector<2x1x1xi32> to vector<2x8x1xi32>
    %107 = arith.select %104, %106, %83 : vector<2x8x1xi1>, vector<2x8x1xi32>
    %108 = vector.shape_cast %98 : vector<2x1x1xi32> to vector<2x1x1xi32>
    %109 = vector.broadcast %108 : vector<2x1x1xi32> to vector<2x8x1xi32>
    %110 = arith.select %104, %109, %86 : vector<2x8x1xi1>, vector<2x8x1xi32>
    %c4_i32 = arith.constant 4 : i32
    %cst_27 = arith.constant dense<-2147483648> : vector<2x1xi32>
    %111 = vector.multi_reduction <maxsi>, %102, %cst_27 [2] : vector<2x1x128xi32> to vector<2x1xi32>
    %112 = vector.shape_cast %111 : vector<2x1xi32> to vector<2x1x1xi32>
    %cst_28 = arith.constant dense<-2147483648> : vector<2x1xi32>
    %113 = vector.multi_reduction <maxsi>, %112, %cst_28 [1] : vector<2x1x1xi32> to vector<2x1xi32>
    %114 = vector.shape_cast %113 : vector<2x1xi32> to vector<2x1x1xi32>
    %115 = vector.broadcast %114 : vector<2x1x1xi32> to vector<2x1x128xi32>
    %116 = arith.cmpi eq, %102, %115 : vector<2x1x128xi32>
    %c128_i32_29 = arith.constant 128 : i32
    %117 = vector.broadcast %c128_i32_29 : i32 to vector<2x1x128xi32>
    %118 = arith.select %116, %11, %117 : vector<2x1x128xi1>, vector<2x1x128xi32>
    %cst_30 = arith.constant dense<2147483647> : vector<2x1xi32>
    %119 = vector.multi_reduction <minsi>, %118, %cst_30 [2] : vector<2x1x128xi32> to vector<2x1xi32>
    %120 = vector.shape_cast %119 : vector<2x1xi32> to vector<2x1x1xi32>
    %cst_31 = arith.constant dense<2147483647> : vector<2x1xi32>
    %121 = vector.multi_reduction <minsi>, %120, %cst_31 [1] : vector<2x1x1xi32> to vector<2x1xi32>
    %122 = vector.shape_cast %121 : vector<2x1xi32> to vector<2x1x1xi32>
    %123 = vector.broadcast %122 : vector<2x1x1xi32> to vector<2x1x128xi32>
    %124 = arith.cmpi eq, %11, %123 : vector<2x1x128xi32>
    %c-2147483648_i32_32 = arith.constant -2147483648 : i32
    %125 = vector.broadcast %c-2147483648_i32_32 : i32 to vector<2x1x128xi32>
    %126 = arith.select %124, %125, %102 : vector<2x1x128xi1>, vector<2x1x128xi32>
    %127 = vector.broadcast %c4_i32 : i32 to vector<2x8x1xi32>
    %128 = arith.cmpi eq, %12, %127 : vector<2x8x1xi32>
    %129 = vector.shape_cast %114 : vector<2x1x1xi32> to vector<2x1x1xi32>
    %130 = vector.broadcast %129 : vector<2x1x1xi32> to vector<2x8x1xi32>
    %131 = arith.select %128, %130, %107 : vector<2x8x1xi1>, vector<2x8x1xi32>
    %132 = vector.shape_cast %122 : vector<2x1x1xi32> to vector<2x1x1xi32>
    %133 = vector.broadcast %132 : vector<2x1x1xi32> to vector<2x8x1xi32>
    %134 = arith.select %128, %133, %110 : vector<2x8x1xi1>, vector<2x8x1xi32>
    %c5_i32 = arith.constant 5 : i32
    %cst_33 = arith.constant dense<-2147483648> : vector<2x1xi32>
    %135 = vector.multi_reduction <maxsi>, %126, %cst_33 [2] : vector<2x1x128xi32> to vector<2x1xi32>
    %136 = vector.shape_cast %135 : vector<2x1xi32> to vector<2x1x1xi32>
    %cst_34 = arith.constant dense<-2147483648> : vector<2x1xi32>
    %137 = vector.multi_reduction <maxsi>, %136, %cst_34 [1] : vector<2x1x1xi32> to vector<2x1xi32>
    %138 = vector.shape_cast %137 : vector<2x1xi32> to vector<2x1x1xi32>
    %139 = vector.broadcast %138 : vector<2x1x1xi32> to vector<2x1x128xi32>
    %140 = arith.cmpi eq, %126, %139 : vector<2x1x128xi32>
    %c128_i32_35 = arith.constant 128 : i32
    %141 = vector.broadcast %c128_i32_35 : i32 to vector<2x1x128xi32>
    %142 = arith.select %140, %11, %141 : vector<2x1x128xi1>, vector<2x1x128xi32>
    %cst_36 = arith.constant dense<2147483647> : vector<2x1xi32>
    %143 = vector.multi_reduction <minsi>, %142, %cst_36 [2] : vector<2x1x128xi32> to vector<2x1xi32>
    %144 = vector.shape_cast %143 : vector<2x1xi32> to vector<2x1x1xi32>
    %cst_37 = arith.constant dense<2147483647> : vector<2x1xi32>
    %145 = vector.multi_reduction <minsi>, %144, %cst_37 [1] : vector<2x1x1xi32> to vector<2x1xi32>
    %146 = vector.shape_cast %145 : vector<2x1xi32> to vector<2x1x1xi32>
    %147 = vector.broadcast %146 : vector<2x1x1xi32> to vector<2x1x128xi32>
    %148 = arith.cmpi eq, %11, %147 : vector<2x1x128xi32>
    %c-2147483648_i32_38 = arith.constant -2147483648 : i32
    %149 = vector.broadcast %c-2147483648_i32_38 : i32 to vector<2x1x128xi32>
    %150 = arith.select %148, %149, %126 : vector<2x1x128xi1>, vector<2x1x128xi32>
    %151 = vector.broadcast %c5_i32 : i32 to vector<2x8x1xi32>
    %152 = arith.cmpi eq, %12, %151 : vector<2x8x1xi32>
    %153 = vector.shape_cast %138 : vector<2x1x1xi32> to vector<2x1x1xi32>
    %154 = vector.broadcast %153 : vector<2x1x1xi32> to vector<2x8x1xi32>
    %155 = arith.select %152, %154, %131 : vector<2x8x1xi1>, vector<2x8x1xi32>
    %156 = vector.shape_cast %146 : vector<2x1x1xi32> to vector<2x1x1xi32>
    %157 = vector.broadcast %156 : vector<2x1x1xi32> to vector<2x8x1xi32>
    %158 = arith.select %152, %157, %134 : vector<2x8x1xi1>, vector<2x8x1xi32>
    %c6_i32 = arith.constant 6 : i32
    %cst_39 = arith.constant dense<-2147483648> : vector<2x1xi32>
    %159 = vector.multi_reduction <maxsi>, %150, %cst_39 [2] : vector<2x1x128xi32> to vector<2x1xi32>
    %160 = vector.shape_cast %159 : vector<2x1xi32> to vector<2x1x1xi32>
    %cst_40 = arith.constant dense<-2147483648> : vector<2x1xi32>
    %161 = vector.multi_reduction <maxsi>, %160, %cst_40 [1] : vector<2x1x1xi32> to vector<2x1xi32>
    %162 = vector.shape_cast %161 : vector<2x1xi32> to vector<2x1x1xi32>
    %163 = vector.broadcast %162 : vector<2x1x1xi32> to vector<2x1x128xi32>
    %164 = arith.cmpi eq, %150, %163 : vector<2x1x128xi32>
    %c128_i32_41 = arith.constant 128 : i32
    %165 = vector.broadcast %c128_i32_41 : i32 to vector<2x1x128xi32>
    %166 = arith.select %164, %11, %165 : vector<2x1x128xi1>, vector<2x1x128xi32>
    %cst_42 = arith.constant dense<2147483647> : vector<2x1xi32>
    %167 = vector.multi_reduction <minsi>, %166, %cst_42 [2] : vector<2x1x128xi32> to vector<2x1xi32>
    %168 = vector.shape_cast %167 : vector<2x1xi32> to vector<2x1x1xi32>
    %cst_43 = arith.constant dense<2147483647> : vector<2x1xi32>
    %169 = vector.multi_reduction <minsi>, %168, %cst_43 [1] : vector<2x1x1xi32> to vector<2x1xi32>
    %170 = vector.shape_cast %169 : vector<2x1xi32> to vector<2x1x1xi32>
    %171 = vector.broadcast %170 : vector<2x1x1xi32> to vector<2x1x128xi32>
    %172 = arith.cmpi eq, %11, %171 : vector<2x1x128xi32>
    %c-2147483648_i32_44 = arith.constant -2147483648 : i32
    %173 = vector.broadcast %c-2147483648_i32_44 : i32 to vector<2x1x128xi32>
    %174 = arith.select %172, %173, %150 : vector<2x1x128xi1>, vector<2x1x128xi32>
    %175 = vector.broadcast %c6_i32 : i32 to vector<2x8x1xi32>
    %176 = arith.cmpi eq, %12, %175 : vector<2x8x1xi32>
    %177 = vector.shape_cast %162 : vector<2x1x1xi32> to vector<2x1x1xi32>
    %178 = vector.broadcast %177 : vector<2x1x1xi32> to vector<2x8x1xi32>
    %179 = arith.select %176, %178, %155 : vector<2x8x1xi1>, vector<2x8x1xi32>
    %180 = vector.shape_cast %170 : vector<2x1x1xi32> to vector<2x1x1xi32>
    %181 = vector.broadcast %180 : vector<2x1x1xi32> to vector<2x8x1xi32>
    %182 = arith.select %176, %181, %158 : vector<2x8x1xi1>, vector<2x8x1xi32>
    %c7_i32 = arith.constant 7 : i32
    %cst_45 = arith.constant dense<-2147483648> : vector<2x1xi32>
    %183 = vector.multi_reduction <maxsi>, %174, %cst_45 [2] : vector<2x1x128xi32> to vector<2x1xi32>
    %184 = vector.shape_cast %183 : vector<2x1xi32> to vector<2x1x1xi32>
    %cst_46 = arith.constant dense<-2147483648> : vector<2x1xi32>
    %185 = vector.multi_reduction <maxsi>, %184, %cst_46 [1] : vector<2x1x1xi32> to vector<2x1xi32>
    %186 = vector.shape_cast %185 : vector<2x1xi32> to vector<2x1x1xi32>
    %187 = vector.broadcast %186 : vector<2x1x1xi32> to vector<2x1x128xi32>
    %188 = arith.cmpi eq, %174, %187 : vector<2x1x128xi32>
    %c128_i32_47 = arith.constant 128 : i32
    %189 = vector.broadcast %c128_i32_47 : i32 to vector<2x1x128xi32>
    %190 = arith.select %188, %11, %189 : vector<2x1x128xi1>, vector<2x1x128xi32>
    %cst_48 = arith.constant dense<2147483647> : vector<2x1xi32>
    %191 = vector.multi_reduction <minsi>, %190, %cst_48 [2] : vector<2x1x128xi32> to vector<2x1xi32>
    %192 = vector.shape_cast %191 : vector<2x1xi32> to vector<2x1x1xi32>
    %cst_49 = arith.constant dense<2147483647> : vector<2x1xi32>
    %193 = vector.multi_reduction <minsi>, %192, %cst_49 [1] : vector<2x1x1xi32> to vector<2x1xi32>
    %194 = vector.shape_cast %193 : vector<2x1xi32> to vector<2x1x1xi32>
    %195 = vector.broadcast %194 : vector<2x1x1xi32> to vector<2x1x128xi32>
    %196 = arith.cmpi eq, %11, %195 : vector<2x1x128xi32>
    %c-2147483648_i32_50 = arith.constant -2147483648 : i32
    %197 = vector.broadcast %c-2147483648_i32_50 : i32 to vector<2x1x128xi32>
    %198 = arith.select %196, %197, %174 : vector<2x1x128xi1>, vector<2x1x128xi32>
    %199 = vector.broadcast %c7_i32 : i32 to vector<2x8x1xi32>
    %200 = arith.cmpi eq, %12, %199 : vector<2x8x1xi32>
    %201 = vector.shape_cast %186 : vector<2x1x1xi32> to vector<2x1x1xi32>
    %202 = vector.broadcast %201 : vector<2x1x1xi32> to vector<2x8x1xi32>
    %203 = arith.select %200, %202, %179 : vector<2x8x1xi1>, vector<2x8x1xi32>
    %204 = vector.shape_cast %194 : vector<2x1x1xi32> to vector<2x1x1xi32>
    %205 = vector.broadcast %204 : vector<2x1x1xi32> to vector<2x8x1xi32>
    %206 = arith.select %200, %205, %182 : vector<2x8x1xi1>, vector<2x8x1xi32>
    %c8_i32 = arith.constant 8 : i32
    %c0_i32_51 = arith.constant 0 : i32
    %207 = vector.broadcast %c0_i32_51 : i32 to vector<2x8x1xi32>
    %208 = arith.cmpi sge, %203, %207 : vector<2x8x1xi32>
    %c2147483647_i32_52 = arith.constant 2147483647 : i32
    %209 = vector.broadcast %c2147483647_i32_52 : i32 to vector<2x8x1xi32>
    %210 = arith.xori %203, %209 : vector<2x8x1xi32>
    %211 = arith.select %208, %203, %210 : vector<2x8x1xi1>, vector<2x8x1xi32>
    %212 = tpu.bitcast %211 : vector<2x8x1xi32> -> vector<2x8x1xf32>
    %213 = arith.negf %212 : vector<2x8x1xf32>
    %214 = math.exp %213 : vector<2x8x1xf32>
    %cst_53 = arith.constant 1.000000e+00 : f32
    %215 = vector.broadcast %cst_53 : f32 to vector<2x8x1xf32>
    %216 = arith.addf %215, %214 : vector<2x8x1xf32>
    %217 = arith.divf %215, %216 : vector<2x8x1xf32>
    %218 = arith.sitofp %206 : vector<2x8x1xi32> to vector<2x8x1xf32>
    %cst_54 = arith.constant 5.000000e-01 : f32
    %219 = vector.broadcast %cst_54 : f32 to vector<2x8x1xf32>
    %220 = arith.addf %218, %219 : vector<2x8x1xf32>
    %cst_55 = arith.constant 2.500000e-01 : f32
    %221 = vector.broadcast %cst_55 : f32 to vector<2x8x1xf32>
    %222 = arith.mulf %220, %221 : vector<2x8x1xf32>
    %223 = math.floor %222 : vector<2x8x1xf32>
    %224 = arith.fptosi %223 : vector<2x8x1xf32> to vector<2x8x1xi32>
    %c4_i32_56 = arith.constant 4 : i32
    %225 = vector.broadcast %c4_i32_56 : i32 to vector<2x8x1xi32>
    %226 = arith.muli %224, %225 : vector<2x8x1xi32>
    %227 = arith.subi %206, %226 : vector<2x8x1xi32>
    %c0_i32_57 = arith.constant 0 : i32
    %228 = vector.broadcast %c0_i32_57 : i32 to vector<2x8x1xi32>
    %229 = arith.cmpi slt, %227, %228 : vector<2x8x1xi32>
    %c1_i32_58 = arith.constant 1 : i32
    %230 = vector.broadcast %c1_i32_58 : i32 to vector<2x8x1xi32>
    %231 = arith.subi %224, %230 : vector<2x8x1xi32>
    %c4_i32_59 = arith.constant 4 : i32
    %232 = vector.broadcast %c4_i32_59 : i32 to vector<2x8x1xi32>
    %233 = arith.cmpi sge, %227, %232 : vector<2x8x1xi32>
    %c1_i32_60 = arith.constant 1 : i32
    %234 = vector.broadcast %c1_i32_60 : i32 to vector<2x8x1xi32>
    %235 = arith.addi %224, %234 : vector<2x8x1xi32>
    %236 = arith.select %233, %235, %224 : vector<2x8x1xi1>, vector<2x8x1xi32>
    %237 = arith.select %229, %231, %236 : vector<2x8x1xi1>, vector<2x8x1xi32>
    %c4_i32_61 = arith.constant 4 : i32
    %238 = vector.broadcast %c4_i32_61 : i32 to vector<2x8x1xi32>
    %239 = arith.muli %237, %238 : vector<2x8x1xi32>
    %240 = arith.subi %206, %239 : vector<2x8x1xi32>
    %241 = tpu.iota {dimensions = array<i32: 2>} : vector<2x8x32xi32>
    %242 = vector.broadcast %237 : vector<2x8x1xi32> to vector<2x8x32xi32>
    %243 = arith.cmpi eq, %242, %241 : vector<2x8x32xi32>
    %244 = arith.extui %243 : vector<2x8x32xi1> to vector<2x8x32xi32>
    %245 = arith.sitofp %244 : vector<2x8x32xi32> to vector<2x8x32xf32>
    %c0_62 = arith.constant 0 : index
    %c0_63 = arith.constant 0 : index
    %c0_64 = arith.constant 0 : index
    %246 = vector.load %arg2[%c0_62, %c0_63, %c0_64] : memref<2x32x128xf32, #tpu.memory_space<vmem>>, vector<2x32x128xf32>
    "tpu.trace_start"() <{level = 10 : i32, message = "bkq,bqw->bkw"}> : () -> ()
    %cst_65 = arith.constant dense<0.000000e+00> : vector<2x8x128xf32>
    %247 = tpu.matmul %245, %246, %cst_65 {dimension_numbers = #tpu.dot_dimension_numbers<[2], [1], [1], [2], [0, 0, 0, 1, 1, 2], [0], [0]>} : vector<2x8x32xf32>, vector<2x32x128xf32>, vector<2x8x128xf32> -> vector<2x8x128xf32>
    "tpu.trace_stop"() : () -> ()
    %248 = tpu.iota {dimensions = array<i32: 2>} : vector<2x8x128xi32>
    %249 = vector.extract_strided_slice %247 {offsets = [0, 0, 0], sizes = [2, 8, 1], strides = [1, 1, 1]} : vector<2x8x128xf32> to vector<2x8x1xf32>
    %250 = vector.extract_strided_slice %247 {offsets = [0, 0, 1], sizes = [2, 8, 1], strides = [1, 1, 1]} : vector<2x8x128xf32> to vector<2x8x1xf32>
    %251 = vector.extract_strided_slice %247 {offsets = [0, 0, 2], sizes = [2, 8, 1], strides = [1, 1, 1]} : vector<2x8x128xf32> to vector<2x8x1xf32>
    %252 = vector.extract_strided_slice %247 {offsets = [0, 0, 3], sizes = [2, 8, 1], strides = [1, 1, 1]} : vector<2x8x128xf32> to vector<2x8x1xf32>
    %cst_66 = arith.constant 5.000000e-01 : f32
    %253 = vector.broadcast %cst_66 : f32 to vector<2x8x1xf32>
    %254 = arith.mulf %253, %251 : vector<2x8x1xf32>
    %255 = arith.subf %249, %254 : vector<2x8x1xf32>
    %cst_67 = arith.constant 3.000000e+01 : f32
    %256 = vector.broadcast %cst_67 : f32 to vector<2x8x1xf32>
    %257 = arith.mulf %255, %256 : vector<2x8x1xf32>
    %cst_68 = arith.constant -1.500000e+01 : f32
    %258 = vector.broadcast %cst_68 : f32 to vector<2x8x1xf32>
    %259 = arith.addf %257, %258 : vector<2x8x1xf32>
    %cst_69 = arith.constant 5.000000e-01 : f32
    %260 = vector.broadcast %cst_69 : f32 to vector<2x8x1xf32>
    %261 = arith.mulf %260, %252 : vector<2x8x1xf32>
    %262 = arith.subf %250, %261 : vector<2x8x1xf32>
    %cst_70 = arith.constant 6.000000e+01 : f32
    %263 = vector.broadcast %cst_70 : f32 to vector<2x8x1xf32>
    %264 = arith.mulf %262, %263 : vector<2x8x1xf32>
    %cst_71 = arith.constant -3.000000e+01 : f32
    %265 = vector.broadcast %cst_71 : f32 to vector<2x8x1xf32>
    %266 = arith.addf %264, %265 : vector<2x8x1xf32>
    %cst_72 = arith.constant 5.000000e-01 : f32
    %267 = vector.broadcast %cst_72 : f32 to vector<2x8x1xf32>
    %268 = arith.mulf %267, %251 : vector<2x8x1xf32>
    %269 = arith.addf %249, %268 : vector<2x8x1xf32>
    %cst_73 = arith.constant 3.000000e+01 : f32
    %270 = vector.broadcast %cst_73 : f32 to vector<2x8x1xf32>
    %271 = arith.mulf %269, %270 : vector<2x8x1xf32>
    %cst_74 = arith.constant -1.500000e+01 : f32
    %272 = vector.broadcast %cst_74 : f32 to vector<2x8x1xf32>
    %273 = arith.addf %271, %272 : vector<2x8x1xf32>
    %cst_75 = arith.constant 5.000000e-01 : f32
    %274 = vector.broadcast %cst_75 : f32 to vector<2x8x1xf32>
    %275 = arith.mulf %274, %252 : vector<2x8x1xf32>
    %276 = arith.addf %250, %275 : vector<2x8x1xf32>
    %cst_76 = arith.constant 6.000000e+01 : f32
    %277 = vector.broadcast %cst_76 : f32 to vector<2x8x1xf32>
    %278 = arith.mulf %276, %277 : vector<2x8x1xf32>
    %cst_77 = arith.constant -3.000000e+01 : f32
    %279 = vector.broadcast %cst_77 : f32 to vector<2x8x1xf32>
    %280 = arith.addf %278, %279 : vector<2x8x1xf32>
    %c1_i32_78 = arith.constant 1 : i32
    %281 = vector.broadcast %c1_i32_78 : i32 to vector<2x8x128xi32>
    %282 = arith.andi %248, %281 : vector<2x8x128xi32>
    %c0_i32_79 = arith.constant 0 : i32
    %283 = vector.broadcast %c0_i32_79 : i32 to vector<2x8x128xi32>
    %284 = arith.cmpi eq, %282, %283 : vector<2x8x128xi32>
    %c8_i32_80 = arith.constant 8 : i32
    %285 = vector.broadcast %c8_i32_80 : i32 to vector<2x8x128xi32>
    %286 = arith.cmpi sge, %248, %285 : vector<2x8x128xi32>
    %c24_i32 = arith.constant 24 : i32
    %287 = vector.broadcast %c24_i32 : i32 to vector<2x8x128xi32>
    %288 = arith.cmpi slt, %248, %287 : vector<2x8x128xi32>
    %289 = arith.andi %286, %288 : vector<2x8x128xi1>
    %cst_81 = arith.constant 3.000000e+01 : f32
    %cst_82 = arith.constant 6.000000e+01 : f32
    %290 = vector.broadcast %cst_81 : f32 to vector<2x8x128xf32>
    %291 = vector.broadcast %cst_82 : f32 to vector<2x8x128xf32>
    %292 = arith.select %284, %290, %291 : vector<2x8x128xi1>, vector<2x8x128xf32>
    %293 = arith.mulf %247, %292 : vector<2x8x128xf32>
    %cst_83 = arith.constant -1.500000e+01 : f32
    %cst_84 = arith.constant -3.000000e+01 : f32
    %294 = vector.broadcast %cst_83 : f32 to vector<2x8x128xf32>
    %295 = vector.broadcast %cst_84 : f32 to vector<2x8x128xf32>
    %296 = arith.select %284, %294, %295 : vector<2x8x128xi1>, vector<2x8x128xf32>
    %297 = arith.addf %293, %296 : vector<2x8x128xf32>
    %298 = arith.select %289, %297, %247 : vector<2x8x128xi1>, vector<2x8x128xf32>
    %c0_i32_85 = arith.constant 0 : i32
    %299 = vector.broadcast %c0_i32_85 : i32 to vector<2x8x128xi32>
    %300 = arith.cmpi eq, %248, %299 : vector<2x8x128xi32>
    %301 = vector.shape_cast %259 : vector<2x8x1xf32> to vector<2x8x1xf32>
    %302 = vector.broadcast %301 : vector<2x8x1xf32> to vector<2x8x128xf32>
    %303 = arith.select %300, %302, %298 : vector<2x8x128xi1>, vector<2x8x128xf32>
    %c1_i32_86 = arith.constant 1 : i32
    %304 = vector.broadcast %c1_i32_86 : i32 to vector<2x8x128xi32>
    %305 = arith.cmpi eq, %248, %304 : vector<2x8x128xi32>
    %306 = vector.shape_cast %266 : vector<2x8x1xf32> to vector<2x8x1xf32>
    %307 = vector.broadcast %306 : vector<2x8x1xf32> to vector<2x8x128xf32>
    %308 = arith.select %305, %307, %303 : vector<2x8x128xi1>, vector<2x8x128xf32>
    %c2_i32_87 = arith.constant 2 : i32
    %309 = vector.broadcast %c2_i32_87 : i32 to vector<2x8x128xi32>
    %310 = arith.cmpi eq, %248, %309 : vector<2x8x128xi32>
    %311 = vector.shape_cast %273 : vector<2x8x1xf32> to vector<2x8x1xf32>
    %312 = vector.broadcast %311 : vector<2x8x1xf32> to vector<2x8x128xf32>
    %313 = arith.select %310, %312, %308 : vector<2x8x128xi1>, vector<2x8x128xf32>
    %c3_i32_88 = arith.constant 3 : i32
    %314 = vector.broadcast %c3_i32_88 : i32 to vector<2x8x128xi32>
    %315 = arith.cmpi eq, %248, %314 : vector<2x8x128xi32>
    %316 = vector.shape_cast %280 : vector<2x8x1xf32> to vector<2x8x1xf32>
    %317 = vector.broadcast %316 : vector<2x8x1xf32> to vector<2x8x128xf32>
    %318 = arith.select %315, %317, %313 : vector<2x8x128xi1>, vector<2x8x128xf32>
    %cst_89 = arith.constant -2.000000e+01 : f32
    %319 = vector.broadcast %cst_89 : f32 to vector<2x8x1xf32>
    %320 = arith.cmpf oge, %259, %319 : vector<2x8x1xf32>
    %cst_90 = arith.constant -3.500000e+01 : f32
    %321 = vector.broadcast %cst_90 : f32 to vector<2x8x1xf32>
    %322 = arith.cmpf oge, %266, %321 : vector<2x8x1xf32>
    %323 = arith.andi %320, %322 : vector<2x8x1xi1>
    %cst_91 = arith.constant -2.000000e+01 : f32
    %324 = vector.broadcast %cst_91 : f32 to vector<2x8x1xf32>
    %325 = arith.cmpf oge, %273, %324 : vector<2x8x1xf32>
    %326 = arith.andi %323, %325 : vector<2x8x1xi1>
    %cst_92 = arith.constant -3.500000e+01 : f32
    %327 = vector.broadcast %cst_92 : f32 to vector<2x8x1xf32>
    %328 = arith.cmpf oge, %280, %327 : vector<2x8x1xf32>
    %329 = arith.andi %326, %328 : vector<2x8x1xi1>
    %cst_93 = arith.constant 2.000000e+01 : f32
    %330 = vector.broadcast %cst_93 : f32 to vector<2x8x1xf32>
    %331 = arith.cmpf ole, %259, %330 : vector<2x8x1xf32>
    %332 = arith.andi %329, %331 : vector<2x8x1xi1>
    %cst_94 = arith.constant 3.500000e+01 : f32
    %333 = vector.broadcast %cst_94 : f32 to vector<2x8x1xf32>
    %334 = arith.cmpf ole, %266, %333 : vector<2x8x1xf32>
    %335 = arith.andi %332, %334 : vector<2x8x1xi1>
    %cst_95 = arith.constant 2.000000e+01 : f32
    %336 = vector.broadcast %cst_95 : f32 to vector<2x8x1xf32>
    %337 = arith.cmpf ole, %273, %336 : vector<2x8x1xf32>
    %338 = arith.andi %335, %337 : vector<2x8x1xi1>
    %cst_96 = arith.constant 3.500000e+01 : f32
    %339 = vector.broadcast %cst_96 : f32 to vector<2x8x1xf32>
    %340 = arith.cmpf ole, %280, %339 : vector<2x8x1xf32>
    %341 = arith.andi %338, %340 : vector<2x8x1xi1>
    %342 = arith.extui %341 : vector<2x8x1xi1> to vector<2x8x1xi32>
    %343 = arith.sitofp %342 : vector<2x8x1xi32> to vector<2x8x1xf32>
    %c4_i32_97 = arith.constant 4 : i32
    %344 = vector.broadcast %c4_i32_97 : i32 to vector<2x8x128xi32>
    %345 = arith.cmpi eq, %248, %344 : vector<2x8x128xi32>
    %346 = vector.shape_cast %217 : vector<2x8x1xf32> to vector<2x8x1xf32>
    %347 = vector.broadcast %346 : vector<2x8x1xf32> to vector<2x8x128xf32>
    %348 = arith.select %345, %347, %318 : vector<2x8x128xi1>, vector<2x8x128xf32>
    %c5_i32_98 = arith.constant 5 : i32
    %349 = vector.broadcast %c5_i32_98 : i32 to vector<2x8x128xi32>
    %350 = arith.cmpi eq, %248, %349 : vector<2x8x128xi32>
    %351 = arith.sitofp %240 : vector<2x8x1xi32> to vector<2x8x1xf32>
    %352 = vector.shape_cast %351 : vector<2x8x1xf32> to vector<2x8x1xf32>
    %353 = vector.broadcast %352 : vector<2x8x1xf32> to vector<2x8x128xf32>
    %354 = arith.select %350, %353, %348 : vector<2x8x128xi1>, vector<2x8x128xf32>
    %c6_i32_99 = arith.constant 6 : i32
    %355 = vector.broadcast %c6_i32_99 : i32 to vector<2x8x128xi32>
    %356 = arith.cmpi eq, %248, %355 : vector<2x8x128xi32>
    %357 = vector.shape_cast %343 : vector<2x8x1xf32> to vector<2x8x1xf32>
    %358 = vector.broadcast %357 : vector<2x8x1xf32> to vector<2x8x128xf32>
    %359 = arith.select %356, %358, %354 : vector<2x8x128xi1>, vector<2x8x128xf32>
    %c0_100 = arith.constant 0 : index
    %c0_101 = arith.constant 0 : index
    %c0_102 = arith.constant 0 : index
    %360 = vector.load %arg3[%c0_100, %c0_101, %c0_102] : memref<2x8x128xf32, #tpu.memory_space<vmem>>, vector<2x8x128xf32>
    tpu.vector_store %arg3[%c0_100, %c0_101, %c0_102], %359 {strides = array<i32>} : memref<2x8x128xf32, #tpu.memory_space<vmem>>, vector<2x8x128xf32>,
    return
  }
  func.func @transform_0(%arg0: i32) -> (i32, i32, i32) {
    %c0_i32 = arith.constant 0 : i32
    %c0_i32_0 = arith.constant 0 : i32
    %c0_i32_1 = arith.constant 0 : i32
    return %arg0, %c0_i32, %c0_i32_0 : i32, i32, i32
  }
  func.func @transform_1(%arg0: i32) -> (i32, i32, i32) {
    %c0_i32 = arith.constant 0 : i32
    %c0_i32_0 = arith.constant 0 : i32
    %c0_i32_1 = arith.constant 0 : i32
    return %arg0, %c0_i32, %c0_i32_0 : i32, i32, i32
  }
  func.func @transform_2(%arg0: i32) -> (i32, i32, i32) {
    %c0_i32 = arith.constant 0 : i32
    %c0_i32_0 = arith.constant 0 : i32
    %c0_i32_1 = arith.constant 0 : i32
    return %arg0, %c0_i32, %c0_i32_0 : i32, i32, i32
  }
}

</mosaic_0001>

<bundles_post_ra>
// kernel: decode.1
= control target key start
LH: loop header
LB: loop body
LE: loop exit
PB: predicated region body
PF: predicated region fallthrough
CT: control target
= control target key end

     0   :  { %vm28_vm0 = vcmask 1040384   ;;  %s1749_s0 = inlined_call_operand.vmem [shape: f32[2,1,128], index: 0, kind: input, shape index: {}]   ;;  %s1750_s1 = inlined_call_operand.vmem [shape: f32[2,32,128], index: 1, kind: input, shape index: {}]   ;;  %s1751_s2 = inlined_call_operand.hbm [shape: f32[2,8,128], index: 2, kind: output, shape index: {}]  }
   0x1   :  { %v12_v0 = vld [vmem:[%s1749_s0] sm:$0x1]  ;;  %v13_v1 = vld [vmem:[%s1749_s0 + $0x1] sm:$0x1] }
   0x2   :  { %vm16_vm1 = vcmp.ge.s32.totalorder %v12_v0, 0  ;;  %v18_v2 = vxor.u32 2147483647, %v12_v0  ;;  %vm17_vm2 = vcmp.ge.s32.totalorder %v13_v1, 0  ;;  %v19_v3 = vxor.u32 2147483647, %v13_v1 }
   0x3   :  { %7 = vsyncpa [#allocation3], 0  ;;  %v22_v20 = vlaneseq  ;;  %s1251_s28 = smov 127   ;;  %s1255_s29 = smov [#allocation2]  }
   0x4   :  { %v1279_v4 = vsel %vm16_vm1, %v12_v0, %v18_v2  ;;  %v1281_v5 = vsel %vm17_vm2, %v13_v1, %v19_v3  ;;  %s1137_s30 = sshll.u32 %s1255_s29, 4  ;;  %s1138_s30 = int_to_ptr.vmem [resolvable:$true] %s1137_s30 }
   0x5   :  { %v29_v6 = vsel %vm28_vm0, %v1279_v4, 2147483648  ;;  %v44_v7 = vsel %vm28_vm0, %v1281_v5, 2147483648  ;;  %v1287_v21 = vshrl.u32 %v22_v20, 7  ;;  %v1289_v23 = vand.u32 127, %v22_v20  ;;  %s1225_s3 = scalar_lea.vmem %s1138_s30, 256  ;;  %p1230_p1 = scmp.lt.s32.totalorder %s1138_s30, %s1138_s30 }
   0x6   :  { %v31_v8 = vshra.s32 %v29_v6, 16  ;;  %v46_v9 = vshra.s32 %v44_v7, 16  ;;  %v30_v12 = vand.u32 65535, %v29_v6  ;;  %v45_v14 = vand.u32 65535, %v44_v7  ;;  %p1226_p0 = scmp.ne.s32.totalorder %s1138_s30, %s1225_s3  ;;  %p1231_p2 = scmp.lt.s32.totalorder %s1225_s3, %s1225_s3 }
   0x7   :  { %v26_v24 = vmul.u32 128, %v1287_v21  ;;  %vm97_vm13 = vcmp.eq.s32.totalorder %v1287_v21, 0  ;;  %vm186_vm14 = vcmp.eq.s32.totalorder %v1287_v21, 1 }
   0x8   :  { %v33_v10 = vcvt.s32.f32 %v31_v8  ;;  %v48_v11 = vcvt.s32.f32 %v46_v9  ;;  %v32_v13 = vcvt.s32.f32 %v30_v12  ;;  %v47_v17 = vcvt.s32.f32 %v45_v14  ;;  %p1232_p3 = por %p1231_p2, %p1230_p1 }
   0x9   :  { %v1293_v29 = vadd.s32 %v26_v24, %v1289_v23  ;;  %v1326_v14 = vsub.s32 0, %v1287_v21 }
   0xa   :  { %34 = vmax.xlane.f32.xlu0 %v33_v10  ;;  %p1233_p4 = pnand %p1232_p3, %p1226_p0 }
   0xe   :  { %49 = vmax.xlane.f32.xlu0 %v48_v11 }
  0x93   :  { %v35_v15 = vpop.xlane.xlu0 %34 }
  0x94   :  { %vm36_vm3 = vcmp.eq.f32.partialorder %v33_v10, %v35_v15  ;;  %v41_v22 = vcvt.f32.s32 %v35_v15 }
  0x95   :  { %v37_v16 = vsel %vm36_vm3, %v32_v13, -inf }
  0x96   :  { %38 = vmax.xlane.f32.xlu1 %v37_v16  ;;  %v42_v26 = vshll.u32 %v41_v22, 16 }
  0x97   :  { %v50_v18 = vpop.xlane.xlu0 %49 }
  0x98   :  { %vm51_vm4 = vcmp.eq.f32.partialorder %v48_v11, %v50_v18  ;;  %v56_v27 = vcvt.f32.s32 %v50_v18 }
  0x99   :  { %v52_v19 = vsel %vm51_vm4, %v47_v17, -inf }
  0x9a   :  { %53 = vmax.xlane.f32.xlu1 %v52_v19  ;;  %v57_v32 = vshll.u32 %v56_v27, 16 }
 0x11f   :  { %v39_v25 = vpop.xlane.xlu1 %38 }
 0x120   :  { %v40_v28 = vcvt.f32.s32 %v39_v25 }
 0x122   :  { %v1295_v30 = vadd.s32 %v42_v26, %v40_v28 }
 0x123   :  { %v54_v31 = vpop.xlane.xlu1 %53 }
 0x124   :  { %vm59_vm5 = vcmp.eq.s32.totalorder %v1279_v4, %v1295_v30  ;;  %v55_v33 = vcvt.f32.s32 %v54_v31  ;;  %v101_v19 = vrot.slane %v1295_v30, %v1326_v14 }
 0x125   :  { %v61_v34 = vsel %vm59_vm5, %v1293_v29, 128 }
 0x126   :  { %v1300_v35 = vadd.s32 %v57_v32, %v55_v33  ;;  %v63_v36 = vsel %vm28_vm0, %v61_v34, 2147483647  ;;  %v106_v27 = vsel %vm97_vm13, %v101_v19, 2147483648 }
 0x127   :  { %v65_v37 = vshra.s32 %v63_v36, 16  ;;  %v64_v43 = vand.u32 65535, %v63_v36 }
 0x128   :  { %vm60_vm6 = vcmp.eq.s32.totalorder %v1281_v5, %v1300_v35  ;;  %v105_v28 = vrot.slane %v1300_v35, %v1326_v14 }
 0x129   :  { %v67_v38 = vcvt.s32.f32 %v65_v37  ;;  %v62_v39 = vsel %vm60_vm6, %v1293_v29, 128  ;;  %v66_v45 = vcvt.s32.f32 %v64_v43 }
 0x12a   :  { %v78_v40 = vsel %vm28_vm0, %v62_v39, 2147483647  ;;  %v107_v37 = vsel %vm97_vm13, %v105_v28, 2147483648 }
 0x12b   :  { %68 = vmin.xlane.f32.xlu0 %v67_v38  ;;  %v80_v41 = vshra.s32 %v78_v40, 16  ;;  %v79_v46 = vand.u32 65535, %v78_v40 }
 0x12d   :  { %v82_v42 = vcvt.s32.f32 %v80_v41  ;;  %v81_v49 = vcvt.s32.f32 %v79_v46 }
 0x12f   :  { %83 = vmin.xlane.f32.xlu1 %v82_v42 }
 0x1b4   :  { %v69_v44 = vpop.xlane.xlu0 %68 }
 0x1b5   :  { %vm70_vm7 = vcmp.eq.f32.partialorder %v67_v38, %v69_v44  ;;  %v75_v51 = vcvt.f32.s32 %v69_v44 }
 0x1b6   :  { %v71_v47 = vsel %vm70_vm7, %v66_v45, inf }
 0x1b7   :  { %72 = vmin.xlane.f32.xlu0 %v71_v47  ;;  %v76_v53 = vshll.u32 %v75_v51, 16 }
 0x1b8   :  { %v84_v48 = vpop.xlane.xlu1 %83 }
 0x1b9   :  { %vm85_vm8 = vcmp.eq.f32.partialorder %v82_v42, %v84_v48  ;;  %v90_v54 = vcvt.f32.s32 %v84_v48 }
 0x1ba   :  { %v86_v50 = vsel %vm85_vm8, %v81_v49, inf  ;;  %vm275_vm8 = vcmp.eq.s32.totalorder %v1287_v21, 2 }
 0x1bb   :  { %87 = vmin.xlane.f32.xlu1 %v86_v50  ;;  %v91_v58 = vshll.u32 %v90_v54, 16 }
 0x240   :  { %v73_v52 = vpop.xlane.xlu0 %72 }
 0x241   :  { %v74_v55 = vcvt.f32.s32 %v73_v52 }
 0x243   :  { %v1307_v56 = vadd.s32 %v76_v53, %v74_v55 }
 0x244   :  { %v88_v57 = vpop.xlane.xlu1 %87 }
 0x245   :  { %vm93_vm9 = vcmp.eq.s32.totalorder %v1293_v29, %v1307_v56  ;;  %v89_v59 = vcvt.f32.s32 %v88_v57  ;;  %v111_v57 = vrot.slane %v1307_v56, %v1326_v14 }
 0x246   :  { %v1312_v60 = vsel %vm93_vm9, 2147483648, %v1279_v4 }
 0x247   :  { %v1314_v61 = vadd.s32 %v91_v58, %v89_v59  ;;  %v118_v62 = vsel %vm28_vm0, %v1312_v60, 2147483648 }
 0x248   :  { %v120_v63 = vshra.s32 %v118_v62, 16  ;;  %v119_v6 = vand.u32 65535, %v118_v62 }
 0x249   :  { %vm94_vm10 = vcmp.eq.s32.totalorder %v1293_v29, %v1314_v61 }
 0x24a   :  { %v122_v0 = vcvt.s32.f32 %v120_v63  ;;  %v1321_v1 = vsel %vm94_vm10, 2147483648, %v1281_v5  ;;  %v121_v8 = vcvt.s32.f32 %v119_v6 }
 0x24b   :  { %v133_v2 = vsel %vm28_vm0, %v1321_v1, 2147483648 }
 0x24c   :  { %123 = vmax.xlane.f32.xlu0 %v122_v0  ;;  %v135_v3 = vshra.s32 %v133_v2, 16  ;;  %v134_v9 = vand.u32 65535, %v133_v2  ;;  %v116_v2 = vsel %vm97_vm13, %v111_v57, 0 }
 0x24e   :  { %v137_v4 = vcvt.s32.f32 %v135_v3  ;;  %v136_v12 = vcvt.s32.f32 %v134_v9  ;;  %v115_v3 = vrot.slane %v1314_v61, %v1326_v14 }
 0x250   :  { %138 = vmax.xlane.f32.xlu1 %v137_v4 }
 0x2d5   :  { %v124_v7 = vpop.xlane.xlu0 %123 }
 0x2d6   :  { %vm125_vm11 = vcmp.eq.f32.partialorder %v122_v0, %v124_v7  ;;  %v130_v5 = vcvt.f32.s32 %v124_v7 }
 0x2d7   :  { %v126_v10 = vsel %vm125_vm11, %v121_v8, -inf }
 0x2d8   :  { %127 = vmax.xlane.f32.xlu0 %v126_v10  ;;  %v131_v16 = vshll.u32 %v130_v5, 16  ;;  %v117_v10 = vsel %vm97_vm13, %v115_v3, 0 }
 0x2d9   :  { %v139_v11 = vpop.xlane.xlu1 %138 }
 0x2da   :  { %vm140_vm12 = vcmp.eq.f32.partialorder %v137_v4, %v139_v11  ;;  %v145_v17 = vcvt.f32.s32 %v139_v11 }
 0x2db   :  { %v141_v13 = vsel %vm140_vm12, %v136_v12, -inf }
 0x2dc   :  { %142 = vmax.xlane.f32.xlu1 %v141_v13  ;;  %v146_v24 = vshll.u32 %v145_v17, 16 }
 0x361   :  { %v128_v15 = vpop.xlane.xlu0 %127 }
 0x362   :  { %v129_v18 = vcvt.f32.s32 %v128_v15 }
 0x364   :  { %v132_v20 = vadd.s32 %v131_v16, %v129_v18 }
 0x365   :  { %v143_v22 = vpop.xlane.xlu1 %142 }
 0x366   :  { %vm148_vm15 = vcmp.eq.s32.totalorder %v1312_v60, %v132_v20  ;;  %v190_v25 = vrot.slane %v132_v20, %v1326_v14  ;;  %v144_v26 = vcvt.f32.s32 %v143_v22 }
 0x367   :  { %v150_v30 = vsel %vm148_vm15, %v1293_v29, 128 }
 0x368   :  { %v1341_v31 = vsel %vm186_vm14, %v190_v25, %v106_v27  ;;  %v147_v32 = vadd.s32 %v146_v24, %v144_v26  ;;  %v152_v33 = vsel %vm28_vm0, %v150_v30, 2147483647 }
 0x369   :  { %v154_v34 = vshra.s32 %v152_v33, 16  ;;  %v153_v43 = vand.u32 65535, %v152_v33 }
 0x36a   :  { %vm149_vm1 = vcmp.eq.s32.totalorder %v1321_v1, %v147_v32  ;;  %v194_v36 = vrot.slane %v147_v32, %v1326_v14 }
 0x36b   :  { %v156_v38 = vcvt.s32.f32 %v154_v34  ;;  %v151_v35 = vsel %vm149_vm1, %v1293_v29, 128  ;;  %v155_v45 = vcvt.s32.f32 %v153_v43 }
 0x36c   :  { %v1351_v39 = vsel %vm186_vm14, %v194_v36, %v107_v37  ;;  %v167_v40 = vsel %vm28_vm0, %v151_v35, 2147483647 }
 0x36d   :  { %157 = vmin.xlane.f32.xlu0 %v156_v38  ;;  %v169_v41 = vshra.s32 %v167_v40, 16  ;;  %v168_v46 = vand.u32 65535, %v167_v40 }
 0x36f   :  { %v171_v42 = vcvt.s32.f32 %v169_v41  ;;  %v170_v49 = vcvt.s32.f32 %v168_v46 }
 0x371   :  { %172 = vmin.xlane.f32.xlu1 %v171_v42 }
 0x3f6   :  { %v158_v44 = vpop.xlane.xlu0 %157 }
 0x3f7   :  { %vm159_vm2 = vcmp.eq.f32.partialorder %v156_v38, %v158_v44  ;;  %v164_v51 = vcvt.f32.s32 %v158_v44 }
 0x3f8   :  { %v160_v47 = vsel %vm159_vm2, %v155_v45, inf  ;;  %vm364_vm2 = vcmp.eq.s32.totalorder %v1287_v21, 3 }
 0x3f9   :  { %161 = vmin.xlane.f32.xlu0 %v160_v47  ;;  %v165_v53 = vshll.u32 %v164_v51, 16 }
 0x3fa   :  { %v173_v48 = vpop.xlane.xlu1 %172 }
 0x3fb   :  { %vm174_vm3 = vcmp.eq.f32.partialorder %v171_v42, %v173_v48  ;;  %v179_v54 = vcvt.f32.s32 %v173_v48 }
 0x3fc   :  { %v175_v50 = vsel %vm174_vm3, %v170_v49, inf }
 0x3fd   :  { %176 = vmin.xlane.f32.xlu1 %v175_v50  ;;  %v180_v62 = vshll.u32 %v179_v54, 16 }
 0x482   :  { %v162_v52 = vpop.xlane.xlu0 %161 }
 0x483   :  { %v163_v55 = vcvt.f32.s32 %v162_v52 }
 0x485   :  { %v166_v58 = vadd.s32 %v165_v53, %v163_v55 }
 0x486   :  { %v177_v59 = vpop.xlane.xlu1 %176 }
 0x487   :  { %vm182_vm4 = vcmp.eq.s32.totalorder %v1293_v29, %v166_v58  ;;  %v200_v63 = vrot.slane %v166_v58, %v1326_v14  ;;  %v178_v0 = vcvt.f32.s32 %v177_v59 }
 0x488   :  { %v1363_v4 = vsel %vm182_vm4, 2147483648, %v1312_v60 }
 0x489   :  { %v1367_v56 = vsel %vm186_vm14, %v200_v63, %v116_v2  ;;  %v181_v6 = vadd.s32 %v180_v62, %v178_v0  ;;  %v207_v7 = vsel %vm28_vm0, %v1363_v4, 2147483648 }
 0x48a   :  { %v209_v8 = vshra.s32 %v207_v7, 16  ;;  %v208_v15 = vand.u32 65535, %v207_v7 }
 0x48b   :  { %vm183_vm5 = vcmp.eq.s32.totalorder %v1293_v29, %v181_v6  ;;  %v204_v9 = vrot.slane %v181_v6, %v1326_v14 }
 0x48c   :  { %v211_v61 = vcvt.s32.f32 %v209_v8  ;;  %v1376_v60 = vsel %vm183_vm5, 2147483648, %v1321_v1  ;;  %v210_v17 = vcvt.s32.f32 %v208_v15 }
 0x48d   :  { %v1380_v11 = vsel %vm186_vm14, %v204_v9, %v117_v10  ;;  %v222_v12 = vsel %vm28_vm0, %v1376_v60, 2147483648 }
 0x48e   :  { %212 = vmax.xlane.f32.xlu0 %v211_v61  ;;  %v224_v13 = vshra.s32 %v222_v12, 16  ;;  %v223_v18 = vand.u32 65535, %v222_v12 }
 0x490   :  { %v226_v5 = vcvt.s32.f32 %v224_v13  ;;  %v225_v20 = vcvt.s32.f32 %v223_v18 }
 0x492   :  { %227 = vmax.xlane.f32.xlu1 %v226_v5 }
 0x517   :  { %v213_v16 = vpop.xlane.xlu0 %212 }
 0x518   :  { %vm214_vm6 = vcmp.eq.f32.partialorder %v211_v61, %v213_v16  ;;  %v219_v24 = vcvt.f32.s32 %v213_v16 }
 0x519   :  { %v215_v19 = vsel %vm214_vm6, %v210_v17, -inf }
 0x51a   :  { %216 = vmax.xlane.f32.xlu0 %v215_v19  ;;  %v220_v26 = vshll.u32 %v219_v24, 16 }
 0x51b   :  { %v228_v1 = vpop.xlane.xlu1 %227 }
 0x51c   :  { %vm229_vm7 = vcmp.eq.f32.partialorder %v226_v5, %v228_v1  ;;  %v234_v27 = vcvt.f32.s32 %v228_v1 }
 0x51d   :  { %v230_v22 = vsel %vm229_vm7, %v225_v20, -inf }
 0x51e   :  { %231 = vmax.xlane.f32.xlu1 %v230_v22  ;;  %v235_v33 = vshll.u32 %v234_v27, 16 }
 0x5a3   :  { %v217_v25 = vpop.xlane.xlu0 %216 }
 0x5a4   :  { %v218_v28 = vcvt.f32.s32 %v217_v25 }
 0x5a6   :  { %v221_v30 = vadd.s32 %v220_v26, %v218_v28 }
 0x5a7   :  { %v232_v32 = vpop.xlane.xlu1 %231 }
 0x5a8   :  { %vm237_vm9 = vcmp.eq.s32.totalorder %v1363_v4, %v221_v30  ;;  %v279_v34 = vrot.slane %v221_v30, %v1326_v14  ;;  %v233_v36 = vcvt.f32.s32 %v232_v32 }
 0x5a9   :  { %v239_v37 = vsel %vm237_vm9, %v1293_v29, 128 }
 0x5aa   :  { %v1391_v38 = vsel %vm275_vm8, %v279_v34, %v1341_v31  ;;  %v236_v35 = vadd.s32 %v235_v33, %v233_v36  ;;  %v241_v40 = vsel %vm28_vm0, %v239_v37, 2147483647 }
 0x5ab   :  { %v243_v41 = vshra.s32 %v241_v40, 16  ;;  %v242_v48 = vand.u32 65535, %v241_v40 }
 0x5ac   :  { %vm238_vm10 = vcmp.eq.s32.totalorder %v1376_v60, %v236_v35  ;;  %v283_v42 = vrot.slane %v236_v35, %v1326_v14 }
 0x5ad   :  { %v245_v43 = vcvt.s32.f32 %v243_v41  ;;  %v240_v44 = vsel %vm238_vm10, %v1293_v29, 128  ;;  %v244_v50 = vcvt.s32.f32 %v242_v48 }
 0x5ae   :  { %v1400_v45 = vsel %vm275_vm8, %v283_v42, %v1351_v39  ;;  %v256_v46 = vsel %vm28_vm0, %v240_v44, 2147483647 }
 0x5af   :  { %246 = vmin.xlane.f32.xlu0 %v245_v43  ;;  %v258_v31 = vshra.s32 %v256_v46, 16  ;;  %v257_v51 = vand.u32 65535, %v256_v46 }
 0x5b1   :  { %v260_v47 = vcvt.s32.f32 %v258_v31  ;;  %v259_v54 = vcvt.s32.f32 %v257_v51 }
 0x5b3   :  { %261 = vmin.xlane.f32.xlu1 %v260_v47 }
 0x638   :  { %v247_v49 = vpop.xlane.xlu0 %246 }
 0x639   :  { %vm248_vm11 = vcmp.eq.f32.partialorder %v245_v43, %v247_v49  ;;  %v253_v39 = vcvt.f32.s32 %v247_v49 }
 0x63a   :  { %v249_v52 = vsel %vm248_vm11, %v244_v50, inf  ;;  %vm453_vm11 = vcmp.eq.s32.totalorder %v1287_v21, 4 }
 0x63b   :  { %250 = vmin.xlane.f32.xlu0 %v249_v52  ;;  %v254_v58 = vshll.u32 %v253_v39, 16 }
 0x63c   :  { %v262_v53 = vpop.xlane.xlu1 %261 }
 0x63d   :  { %vm263_vm12 = vcmp.eq.f32.partialorder %v260_v47, %v262_v53  ;;  %v268_v59 = vcvt.f32.s32 %v262_v53 }
 0x63e   :  { %v264_v55 = vsel %vm263_vm12, %v259_v54, inf }
 0x63f   :  { %265 = vmin.xlane.f32.xlu1 %v264_v55  ;;  %v269_v2 = vshll.u32 %v268_v59, 16 }
 0x6c4   :  { %v251_v57 = vpop.xlane.xlu0 %250 }
 0x6c5   :  { %v252_v62 = vcvt.f32.s32 %v251_v57 }
 0x6c7   :  { %v255_v63 = vadd.s32 %v254_v58, %v252_v62 }
 0x6c8   :  { %v266_v0 = vpop.xlane.xlu1 %265 }
 0x6c9   :  { %vm271_vm13 = vcmp.eq.s32.totalorder %v1293_v29, %v255_v63  ;;  %v289_v3 = vrot.slane %v255_v63, %v1326_v14  ;;  %v267_v6 = vcvt.f32.s32 %v266_v0 }
 0x6ca   :  { %v1406_v7 = vsel %vm271_vm13, 2147483648, %v1363_v4 }
 0x6cb   :  { %v1411_v8 = vsel %vm275_vm8, %v289_v3, %v1367_v56  ;;  %v270_v9 = vadd.s32 %v269_v2, %v267_v6  ;;  %v296_v10 = vsel %vm28_vm0, %v1406_v7, 2147483648 }
 0x6cc   :  { %v298_v61 = vshra.s32 %v296_v10, 16  ;;  %v297_v17 = vand.u32 65535, %v296_v10 }
 0x6cd   :  { %vm272_vm14 = vcmp.eq.s32.totalorder %v1293_v29, %v270_v9  ;;  %v293_v12 = vrot.slane %v270_v9, %v1326_v14 }
 0x6ce   :  { %v300_v13 = vcvt.s32.f32 %v298_v61  ;;  %v1418_v5 = vsel %vm272_vm14, 2147483648, %v1376_v60  ;;  %v299_v19 = vcvt.s32.f32 %v297_v17 }
 0x6cf   :  { %v1423_v4 = vsel %vm275_vm8, %v293_v12, %v1380_v11  ;;  %v311_v56 = vsel %vm28_vm0, %v1418_v5, 2147483648 }
 0x6d0   :  { %301 = vmax.xlane.f32.xlu0 %v300_v13  ;;  %v313_v15 = vshra.s32 %v311_v56, 16  ;;  %v312_v1 = vand.u32 65535, %v311_v56 }
 0x6d2   :  { %v315_v16 = vcvt.s32.f32 %v313_v15  ;;  %v314_v22 = vcvt.s32.f32 %v312_v1 }
 0x6d4   :  { %316 = vmax.xlane.f32.xlu1 %v315_v16 }
 0x759   :  { %v302_v18 = vpop.xlane.xlu0 %301 }
 0x75a   :  { %vm303_vm15 = vcmp.eq.f32.partialorder %v300_v13, %v302_v18  ;;  %v308_v11 = vcvt.f32.s32 %v302_v18 }
 0x75b   :  { %v304_v20 = vsel %vm303_vm15, %v299_v19, -inf }
 0x75c   :  { %305 = vmax.xlane.f32.xlu0 %v304_v20  ;;  %v309_v26 = vshll.u32 %v308_v11, 16 }
 0x75d   :  { %v317_v60 = vpop.xlane.xlu1 %316 }
 0x75e   :  { %vm318_vm1 = vcmp.eq.f32.partialorder %v315_v16, %v317_v60  ;;  %v323_v27 = vcvt.f32.s32 %v317_v60 }
 0x75f   :  { %v319_v24 = vsel %vm318_vm1, %v314_v22, -inf }
 0x760   :  { %320 = vmax.xlane.f32.xlu1 %v319_v24  ;;  %v324_v33 = vshll.u32 %v323_v27, 16 }
 0x7e5   :  { %v306_v25 = vpop.xlane.xlu0 %305 }
 0x7e6   :  { %v307_v28 = vcvt.f32.s32 %v306_v25 }
 0x7e8   :  { %v310_v30 = vadd.s32 %v309_v26, %v307_v28 }
 0x7e9   :  { %v321_v32 = vpop.xlane.xlu1 %320 }
 0x7ea   :  { %vm326_vm3 = vcmp.eq.s32.totalorder %v1406_v7, %v310_v30  ;;  %v368_v34 = vrot.slane %v310_v30, %v1326_v14  ;;  %v322_v36 = vcvt.f32.s32 %v321_v32 }
 0x7eb   :  { %v328_v37 = vsel %vm326_vm3, %v1293_v29, 128 }
 0x7ec   :  { %v1434_v35 = vsel %vm364_vm2, %v368_v34, %v1391_v38  ;;  %v325_v40 = vadd.s32 %v324_v33, %v322_v36  ;;  %v330_v41 = vsel %vm28_vm0, %v328_v37, 2147483647 }
 0x7ed   :  { %v332_v42 = vshra.s32 %v330_v41, 16  ;;  %v331_v49 = vand.u32 65535, %v330_v41 }
 0x7ee   :  { %vm327_vm4 = vcmp.eq.s32.totalorder %v1418_v5, %v325_v40  ;;  %v372_v43 = vrot.slane %v325_v40, %v1326_v14 }
 0x7ef   :  { %v334_v44 = vcvt.s32.f32 %v332_v42  ;;  %v329_v46 = vsel %vm327_vm4, %v1293_v29, 128  ;;  %v333_v51 = vcvt.s32.f32 %v331_v49 }
 0x7f0   :  { %v1443_v31 = vsel %vm364_vm2, %v372_v43, %v1400_v45  ;;  %v345_v47 = vsel %vm28_vm0, %v329_v46, 2147483647 }
 0x7f1   :  { %335 = vmin.xlane.f32.xlu0 %v334_v44  ;;  %v347_v38 = vshra.s32 %v345_v47, 16  ;;  %v346_v52 = vand.u32 65535, %v345_v47 }
 0x7f3   :  { %v349_v48 = vcvt.s32.f32 %v347_v38  ;;  %v348_v55 = vcvt.s32.f32 %v346_v52 }
 0x7f5   :  { %350 = vmin.xlane.f32.xlu1 %v349_v48 }
 0x87a   :  { %v336_v50 = vpop.xlane.xlu0 %335 }
 0x87b   :  { %vm337_vm5 = vcmp.eq.f32.partialorder %v334_v44, %v336_v50  ;;  %v342_v45 = vcvt.f32.s32 %v336_v50 }
 0x87c   :  { %v338_v53 = vsel %vm337_vm5, %v333_v51, inf  ;;  %vm542_vm5 = vcmp.eq.s32.totalorder %v1287_v21, 5 }
 0x87d   :  { %339 = vmin.xlane.f32.xlu0 %v338_v53  ;;  %v343_v58 = vshll.u32 %v342_v45, 16 }
 0x87e   :  { %v351_v54 = vpop.xlane.xlu1 %350 }
 0x87f   :  { %vm352_vm6 = vcmp.eq.f32.partialorder %v349_v48, %v351_v54  ;;  %v357_v59 = vcvt.f32.s32 %v351_v54 }
 0x880   :  { %v353_v39 = vsel %vm352_vm6, %v348_v55, inf }
 0x881   :  { %354 = vmin.xlane.f32.xlu1 %v353_v39  ;;  %v358_v2 = vshll.u32 %v357_v59, 16 }
 0x906   :  { %v340_v57 = vpop.xlane.xlu0 %339 }
 0x907   :  { %v341_v62 = vcvt.f32.s32 %v340_v57 }
 0x909   :  { %v344_v63 = vadd.s32 %v343_v58, %v341_v62 }
 0x90a   :  { %v355_v0 = vpop.xlane.xlu1 %354 }
 0x90b   :  { %vm360_vm7 = vcmp.eq.s32.totalorder %v1293_v29, %v344_v63  ;;  %v378_v3 = vrot.slane %v344_v63, %v1326_v14  ;;  %v356_v6 = vcvt.f32.s32 %v355_v0 }
 0x90c   :  { %v1449_v9 = vsel %vm360_vm7, 2147483648, %v1406_v7 }
 0x90d   :  { %v1454_v10 = vsel %vm364_vm2, %v378_v3, %v1411_v8  ;;  %v359_v61 = vadd.s32 %v358_v2, %v356_v6  ;;  %v385_v12 = vsel %vm28_vm0, %v1449_v9, 2147483648 }
 0x90e   :  { %v387_v13 = vshra.s32 %v385_v12, 16  ;;  %v386_v19 = vand.u32 65535, %v385_v12 }
 0x90f   :  { %vm361_vm8 = vcmp.eq.s32.totalorder %v1293_v29, %v359_v61  ;;  %v382_v56 = vrot.slane %v359_v61, %v1326_v14 }
 0x910   :  { %v389_v15 = vcvt.s32.f32 %v387_v13  ;;  %v1461_v16 = vsel %vm361_vm8, 2147483648, %v1418_v5  ;;  %v388_v20 = vcvt.s32.f32 %v386_v19 }
 0x911   :  { %v1466_v7 = vsel %vm364_vm2, %v382_v56, %v1423_v4  ;;  %v400_v8 = vsel %vm28_vm0, %v1461_v16, 2147483648 }
 0x912   :  { %390 = vmax.xlane.f32.xlu0 %v389_v15  ;;  %v402_v17 = vshra.s32 %v400_v8, 16  ;;  %v401_v60 = vand.u32 65535, %v400_v8 }
 0x914   :  { %v404_v18 = vcvt.s32.f32 %v402_v17  ;;  %v403_v24 = vcvt.s32.f32 %v401_v60 }
 0x916   :  { %405 = vmax.xlane.f32.xlu1 %v404_v18 }
 0x99b   :  { %v391_v1 = vpop.xlane.xlu0 %390 }
 0x99c   :  { %vm392_vm9 = vcmp.eq.f32.partialorder %v389_v15, %v391_v1  ;;  %v397_v4 = vcvt.f32.s32 %v391_v1 }
 0x99d   :  { %v393_v22 = vsel %vm392_vm9, %v388_v20, -inf }
 0x99e   :  { %394 = vmax.xlane.f32.xlu0 %v393_v22  ;;  %v398_v26 = vshll.u32 %v397_v4, 16 }
 0x99f   :  { %v406_v5 = vpop.xlane.xlu1 %405 }
 0x9a0   :  { %vm407_vm10 = vcmp.eq.f32.partialorder %v404_v18, %v406_v5  ;;  %v412_v27 = vcvt.f32.s32 %v406_v5 }
 0x9a1   :  { %v408_v11 = vsel %vm407_vm10, %v403_v24, -inf }
 0x9a2   :  { %409 = vmax.xlane.f32.xlu1 %v408_v11  ;;  %v413_v33 = vshll.u32 %v412_v27, 16 }
 0xa27   :  { %v395_v25 = vpop.xlane.xlu0 %394 }
 0xa28   :  { %v396_v28 = vcvt.f32.s32 %v395_v25 }
 0xa2a   :  { %v399_v30 = vadd.s32 %v398_v26, %v396_v28 }
 0xa2b   :  { %v410_v32 = vpop.xlane.xlu1 %409 }
 0xa2c   :  { %vm415_vm12 = vcmp.eq.s32.totalorder %v1449_v9, %v399_v30  ;;  %v457_v34 = vrot.slane %v399_v30, %v1326_v14  ;;  %v411_v36 = vcvt.f32.s32 %v410_v32 }
 0xa2d   :  { %v417_v37 = vsel %vm415_vm12, %v1293_v29, 128 }
 0xa2e   :  { %v1477_v40 = vsel %vm453_vm11, %v457_v34, %v1434_v35  ;;  %v414_v41 = vadd.s32 %v413_v33, %v411_v36  ;;  %v419_v42 = vsel %vm28_vm0, %v417_v37, 2147483647 }
 0xa2f   :  { %v421_v43 = vshra.s32 %v419_v42, 16  ;;  %v420_v50 = vand.u32 65535, %v419_v42 }
 0xa30   :  { %vm416_vm13 = vcmp.eq.s32.totalorder %v1461_v16, %v414_v41  ;;  %v461_v44 = vrot.slane %v414_v41, %v1326_v14 }
 0xa31   :  { %v423_v46 = vcvt.s32.f32 %v421_v43  ;;  %v418_v47 = vsel %vm416_vm13, %v1293_v29, 128  ;;  %v422_v52 = vcvt.s32.f32 %v420_v50 }
 0xa32   :  { %v1486_v38 = vsel %vm453_vm11, %v461_v44, %v1443_v31  ;;  %v434_v48 = vsel %vm28_vm0, %v418_v47, 2147483647 }
 0xa33   :  { %424 = vmin.xlane.f32.xlu0 %v423_v46  ;;  %v436_v35 = vshra.s32 %v434_v48, 16  ;;  %v435_v53 = vand.u32 65535, %v434_v48 }
 0xa35   :  { %v438_v49 = vcvt.s32.f32 %v436_v35  ;;  %v437_v39 = vcvt.s32.f32 %v435_v53 }
 0xa37   :  { %439 = vmin.xlane.f32.xlu1 %v438_v49 }
 0xabc   :  { %v425_v51 = vpop.xlane.xlu0 %424 }
 0xabd   :  { %vm426_vm14 = vcmp.eq.f32.partialorder %v423_v46, %v425_v51  ;;  %v431_v31 = vcvt.f32.s32 %v425_v51 }
 0xabe   :  { %v427_v54 = vsel %vm426_vm14, %v422_v52, inf  ;;  %vm631_vm14 = vcmp.eq.s32.totalorder %v1287_v21, 6 }
 0xabf   :  { %428 = vmin.xlane.f32.xlu0 %v427_v54  ;;  %v432_v58 = vshll.u32 %v431_v31, 16 }
 0xac0   :  { %v440_v55 = vpop.xlane.xlu1 %439 }
 0xac1   :  { %vm441_vm15 = vcmp.eq.f32.partialorder %v438_v49, %v440_v55  ;;  %v446_v59 = vcvt.f32.s32 %v440_v55 }
 0xac2   :  { %v442_v45 = vsel %vm441_vm15, %v437_v39, inf }
 0xac3   :  { %443 = vmin.xlane.f32.xlu1 %v442_v45  ;;  %v447_v2 = vshll.u32 %v446_v59, 16 }
 0xb48   :  { %v429_v57 = vpop.xlane.xlu0 %428 }
 0xb49   :  { %v430_v62 = vcvt.f32.s32 %v429_v57 }
 0xb4b   :  { %v433_v63 = vadd.s32 %v432_v58, %v430_v62 }
 0xb4c   :  { %v444_v0 = vpop.xlane.xlu1 %443 }
 0xb4d   :  { %vm449_vm1 = vcmp.eq.s32.totalorder %v1293_v29, %v433_v63  ;;  %v467_v3 = vrot.slane %v433_v63, %v1326_v14  ;;  %v445_v6 = vcvt.f32.s32 %v444_v0 }
 0xb4e   :  { %v1492_v61 = vsel %vm449_vm1, 2147483648, %v1449_v9 }
 0xb4f   :  { %v1497_v12 = vsel %vm453_vm11, %v467_v3, %v1454_v10  ;;  %v448_v13 = vadd.s32 %v447_v2, %v445_v6  ;;  %v474_v56 = vsel %vm28_vm0, %v1492_v61, 2147483648 }
 0xb50   :  { %v476_v15 = vshra.s32 %v474_v56, 16  ;;  %v475_v20 = vand.u32 65535, %v474_v56 }
 0xb51   :  { %vm450_vm2 = vcmp.eq.s32.totalorder %v1293_v29, %v448_v13  ;;  %v471_v8 = vrot.slane %v448_v13, %v1326_v14 }
 0xb52   :  { %v478_v17 = vcvt.s32.f32 %v476_v15  ;;  %v1504_v18 = vsel %vm450_vm2, 2147483648, %v1461_v16  ;;  %v477_v22 = vcvt.s32.f32 %v475_v20 }
 0xb53   :  { %v1509_v9 = vsel %vm453_vm11, %v471_v8, %v1466_v7  ;;  %v489_v10 = vsel %vm28_vm0, %v1504_v18, 2147483648 }
 0xb54   :  { %479 = vmax.xlane.f32.xlu0 %v478_v17  ;;  %v491_v19 = vshra.s32 %v489_v10, 16  ;;  %v490_v5 = vand.u32 65535, %v489_v10 }
 0xb56   :  { %v493_v1 = vcvt.s32.f32 %v491_v19  ;;  %v492_v11 = vcvt.s32.f32 %v490_v5 }
 0xb58   :  { %494 = vmax.xlane.f32.xlu1 %v493_v1 }
 0xbdd   :  { %v480_v60 = vpop.xlane.xlu0 %479 }
 0xbde   :  { %vm481_vm3 = vcmp.eq.f32.partialorder %v478_v17, %v480_v60  ;;  %v486_v7 = vcvt.f32.s32 %v480_v60 }
 0xbdf   :  { %v482_v24 = vsel %vm481_vm3, %v477_v22, -inf }
 0xbe0   :  { %483 = vmax.xlane.f32.xlu0 %v482_v24  ;;  %v487_v26 = vshll.u32 %v486_v7, 16 }
 0xbe1   :  { %v495_v16 = vpop.xlane.xlu1 %494 }
 0xbe2   :  { %vm496_vm4 = vcmp.eq.f32.partialorder %v493_v1, %v495_v16  ;;  %v501_v27 = vcvt.f32.s32 %v495_v16 }
 0xbe3   :  { %v497_v4 = vsel %vm496_vm4, %v492_v11, -inf }
 0xbe4   :  { %498 = vmax.xlane.f32.xlu1 %v497_v4  ;;  %v502_v33 = vshll.u32 %v501_v27, 16 }
 0xc69   :  { %v484_v25 = vpop.xlane.xlu0 %483 }
 0xc6a   :  { %v485_v28 = vcvt.f32.s32 %v484_v25 }
 0xc6c   :  { %v488_v30 = vadd.s32 %v487_v26, %v485_v28 }
 0xc6d   :  { %v499_v32 = vpop.xlane.xlu1 %498 }
 0xc6e   :  { %vm504_vm6 = vcmp.eq.s32.totalorder %v1492_v61, %v488_v30  ;;  %v546_v34 = vrot.slane %v488_v30, %v1326_v14  ;;  %v500_v36 = vcvt.f32.s32 %v499_v32 }
 0xc6f   :  { %v506_v37 = vsel %vm504_vm6, %v1293_v29, 128 }
 0xc70   :  { %v1520_v41 = vsel %vm542_vm5, %v546_v34, %v1477_v40  ;;  %v503_v42 = vadd.s32 %v502_v33, %v500_v36  ;;  %v508_v43 = vsel %vm28_vm0, %v506_v37, 2147483647 }
 0xc71   :  { %v510_v44 = vshra.s32 %v508_v43, 16  ;;  %v509_v51 = vand.u32 65535, %v508_v43 }
 0xc72   :  { %vm505_vm7 = vcmp.eq.s32.totalorder %v1504_v18, %v503_v42  ;;  %v550_v46 = vrot.slane %v503_v42, %v1326_v14 }
 0xc73   :  { %v512_v47 = vcvt.s32.f32 %v510_v44  ;;  %v507_v48 = vsel %vm505_vm7, %v1293_v29, 128  ;;  %v511_v53 = vcvt.s32.f32 %v509_v51 }
 0xc74   :  { %v1529_v35 = vsel %vm542_vm5, %v550_v46, %v1486_v38  ;;  %v523_v49 = vsel %vm28_vm0, %v507_v48, 2147483647 }
 0xc75   :  { %513 = vmin.xlane.f32.xlu0 %v512_v47  ;;  %v525_v40 = vshra.s32 %v523_v49, 16  ;;  %v524_v54 = vand.u32 65535, %v523_v49 }
 0xc77   :  { %v527_v50 = vcvt.s32.f32 %v525_v40  ;;  %v526_v45 = vcvt.s32.f32 %v524_v54 }
 0xc79   :  { %528 = vmin.xlane.f32.xlu1 %v527_v50 }
 0xcfe   :  { %v514_v52 = vpop.xlane.xlu0 %513 }
 0xcff   :  { %vm515_vm8 = vcmp.eq.f32.partialorder %v512_v47, %v514_v52  ;;  %v520_v38 = vcvt.f32.s32 %v514_v52 }
 0xd00   :  { %v516_v55 = vsel %vm515_vm8, %v511_v53, inf  ;;  %vm716_vm8 = vcmp.eq.s32.totalorder %v1287_v21, 7 }
 0xd01   :  { %517 = vmin.xlane.f32.xlu0 %v516_v55  ;;  %v521_v58 = vshll.u32 %v520_v38, 16 }
 0xd02   :  { %v529_v39 = vpop.xlane.xlu1 %528 }
 0xd03   :  { %vm530_vm9 = vcmp.eq.f32.partialorder %v527_v50, %v529_v39  ;;  %v535_v59 = vcvt.f32.s32 %v529_v39 }
 0xd04   :  { %v531_v31 = vsel %vm530_vm9, %v526_v45, inf }
 0xd05   :  { %532 = vmin.xlane.f32.xlu1 %v531_v31  ;;  %v536_v2 = vshll.u32 %v535_v59, 16 }
 0xd8a   :  { %v518_v57 = vpop.xlane.xlu0 %517 }
 0xd8b   :  { %v519_v62 = vcvt.f32.s32 %v518_v57 }
 0xd8d   :  { %v522_v63 = vadd.s32 %v521_v58, %v519_v62 }
 0xd8e   :  { %v533_v0 = vpop.xlane.xlu1 %532 }
 0xd8f   :  { %vm538_vm10 = vcmp.eq.s32.totalorder %v1293_v29, %v522_v63  ;;  %v556_v3 = vrot.slane %v522_v63, %v1326_v14  ;;  %v534_v6 = vcvt.f32.s32 %v533_v0 }
 0xd90   :  { %v1535_v13 = vsel %vm538_vm10, 2147483648, %v1492_v61 }
 0xd91   :  { %v1540_v56 = vsel %vm542_vm5, %v556_v3, %v1497_v12  ;;  %v537_v15 = vadd.s32 %v536_v2, %v534_v6  ;;  %v563_v8 = vsel %vm28_vm0, %v1535_v13, 2147483648 }
 0xd92   :  { %v565_v17 = vshra.s32 %v563_v8, 16  ;;  %v564_v22 = vand.u32 65535, %v563_v8 }
 0xd93   :  { %vm539_vm11 = vcmp.eq.s32.totalorder %v1293_v29, %v537_v15  ;;  %v560_v10 = vrot.slane %v537_v15, %v1326_v14 }
 0xd94   :  { %v567_v19 = vcvt.s32.f32 %v565_v17  ;;  %v1547_v1 = vsel %vm539_vm11, 2147483648, %v1504_v18  ;;  %v566_v24 = vcvt.s32.f32 %v564_v22 }
 0xd95   :  { %v1552_v61 = vsel %vm542_vm5, %v560_v10, %v1509_v9  ;;  %v578_v12 = vsel %vm28_vm0, %v1547_v1, 2147483648 }
 0xd96   :  { %568 = vmax.xlane.f32.xlu0 %v567_v19  ;;  %v580_v20 = vshra.s32 %v578_v12, 16  ;;  %v579_v16 = vand.u32 65535, %v578_v12 }
 0xd98   :  { %v582_v60 = vcvt.s32.f32 %v580_v20  ;;  %v581_v4 = vcvt.s32.f32 %v579_v16 }
 0xd9a   :  { %583 = vmax.xlane.f32.xlu1 %v582_v60 }
 0xe1f   :  { %v569_v5 = vpop.xlane.xlu0 %568 }
 0xe20   :  { %vm570_vm12 = vcmp.eq.f32.partialorder %v567_v19, %v569_v5  ;;  %v575_v9 = vcvt.f32.s32 %v569_v5 }
 0xe21   :  { %v571_v11 = vsel %vm570_vm12, %v566_v24, -inf }
 0xe22   :  { %572 = vmax.xlane.f32.xlu0 %v571_v11  ;;  %v576_v26 = vshll.u32 %v575_v9, 16 }
 0xe23   :  { %v584_v18 = vpop.xlane.xlu1 %583 }
 0xe24   :  { %vm585_vm13 = vcmp.eq.f32.partialorder %v582_v60, %v584_v18  ;;  %v590_v27 = vcvt.f32.s32 %v584_v18 }
 0xe25   :  { %v586_v7 = vsel %vm585_vm13, %v581_v4, -inf }
 0xe26   :  { %587 = vmax.xlane.f32.xlu1 %v586_v7  ;;  %v591_v33 = vshll.u32 %v590_v27, 16 }
 0xeab   :  { %v573_v25 = vpop.xlane.xlu0 %572 }
 0xeac   :  { %v574_v28 = vcvt.f32.s32 %v573_v25 }
 0xeae   :  { %v577_v30 = vadd.s32 %v576_v26, %v574_v28 }
 0xeaf   :  { %v588_v32 = vpop.xlane.xlu1 %587 }
 0xeb0   :  { %vm593_vm15 = vcmp.eq.s32.totalorder %v1535_v13, %v577_v30  ;;  %v635_v34 = vrot.slane %v577_v30, %v1326_v14  ;;  %v589_v36 = vcvt.f32.s32 %v588_v32 }
 0xeb1   :  { %v595_v37 = vsel %vm593_vm15, %v1293_v29, 128  ;;  %vm801_vm15 = vcmask 261120  }
 0xeb2   :  { %v1563_v42 = vsel %vm631_vm14, %v635_v34, %v1520_v41  ;;  %v592_v43 = vadd.s32 %v591_v33, %v589_v36  ;;  %v597_v44 = vsel %vm28_vm0, %v595_v37, 2147483647 }
 0xeb3   :  { %v599_v46 = vshra.s32 %v597_v44, 16  ;;  %v598_v52 = vand.u32 65535, %v597_v44 }
 0xeb4   :  { %vm594_vm1 = vcmp.eq.s32.totalorder %v1547_v1, %v592_v43  ;;  %v639_v47 = vrot.slane %v592_v43, %v1326_v14 }
 0xeb5   :  { %v601_v48 = vcvt.s32.f32 %v599_v46  ;;  %v596_v49 = vsel %vm594_vm1, %v1293_v29, 128  ;;  %v600_v54 = vcvt.s32.f32 %v598_v52 }
 0xeb6   :  { %v1572_v40 = vsel %vm631_vm14, %v639_v47, %v1529_v35  ;;  %v612_v50 = vsel %vm28_vm0, %v596_v49, 2147483647 }
 0xeb7   :  { %602 = vmin.xlane.f32.xlu0 %v601_v48  ;;  %v614_v41 = vshra.s32 %v612_v50, 16  ;;  %v613_v55 = vand.u32 65535, %v612_v50 }
 0xeb9   :  { %v616_v51 = vcvt.s32.f32 %v614_v41  ;;  %v615_v31 = vcvt.s32.f32 %v613_v55 }
 0xebb   :  { %617 = vmin.xlane.f32.xlu1 %v616_v51 }
 0xf40   :  { %v603_v53 = vpop.xlane.xlu0 %602 }
 0xf41   :  { %vm604_vm2 = vcmp.eq.f32.partialorder %v601_v48, %v603_v53  ;;  %v609_v35 = vcvt.f32.s32 %v603_v53 }
 0xf42   :  { %v605_v39 = vsel %vm604_vm2, %v600_v54, inf }
 0xf43   :  { %606 = vmin.xlane.f32.xlu0 %v605_v39  ;;  %v610_v58 = vshll.u32 %v609_v35, 16  ;;  %v796_v35 = vld [vmem:[%s1750_s1 + $0x18] sm:$0xff] }
 0xf44   :  { %v618_v45 = vpop.xlane.xlu1 %617 }
 0xf45   :  { %vm619_vm3 = vcmp.eq.f32.partialorder %v616_v51, %v618_v45  ;;  %v624_v59 = vcvt.f32.s32 %v618_v45 }
 0xf46   :  { %v620_v38 = vsel %vm619_vm3, %v615_v31, inf }
 0xf47   :  { %621 = vmin.xlane.f32.xlu1 %v620_v38  ;;  %v625_v2 = vshll.u32 %v624_v59, 16  ;;  %v794_v59 = vld [vmem:[%s1750_s1 + $0x8] sm:$0xff] }
 0xfcc   :  { %v607_v57 = vpop.xlane.xlu0 %606 }
 0xfcd   :  { %v608_v62 = vcvt.f32.s32 %v607_v57  ;;  %v795_v57 = vld [vmem:[%s1750_s1 + $0x10] sm:$0xff] }
 0xfcf   :  { %v611_v63 = vadd.s32 %v610_v58, %v608_v62  ;;  %v800_v58 = vld [vmem:[%s1750_s1 + $0x38] sm:$0xff]  ;;  %v799_v62 = vld [vmem:[%s1750_s1 + $0x30] sm:$0xff] }
 0xfd0   :  { %v622_v0 = vpop.xlane.xlu1 %621 }
 0xfd1   :  { %vm627_vm4 = vcmp.eq.s32.totalorder %v1293_v29, %v611_v63  ;;  %v645_v3 = vrot.slane %v611_v63, %v1326_v14  ;;  %v623_v6 = vcvt.f32.s32 %v622_v0  ;;  %v793_v63 = vld [vmem:[%s1750_s1] sm:$0xff]  ;;  %v798_v0 = vld [vmem:[%s1750_s1 + $0x28] sm:$0xff] }
 0xfd2   :  { %v629_v15 = vsel %vm627_vm4, 2147483648, %v1535_v13 }
 0xfd3   :  { %v1581_v8 = vsel %vm631_vm14, %v645_v3, %v1540_v56  ;;  %v626_v17 = vadd.s32 %v625_v2, %v623_v6  ;;  %v652_v10 = vsel %vm28_vm0, %v629_v15, 2147483648  ;;  %v797_v2 = vld [vmem:[%s1750_s1 + $0x20] sm:$0xff]  ;;  %s1250_s1 = smov 126  }
 0xfd4   :  { %v654_v19 = vshra.s32 %v652_v10, 16  ;;  %v653_v24 = vand.u32 65535, %v652_v10 }
 0xfd5   :  { %vm628_vm5 = vcmp.eq.s32.totalorder %v1293_v29, %v626_v17  ;;  %v649_v12 = vrot.slane %v626_v17, %v1326_v14 }
 0xfd6   :  { %v656_v20 = vcvt.s32.f32 %v654_v19  ;;  %v630_v60 = vsel %vm628_vm5, 2147483648, %v1547_v1  ;;  %v655_v11 = vcvt.s32.f32 %v653_v24 }
 0xfd7   :  { %v1590_v13 = vsel %vm631_vm14, %v649_v12, %v1552_v61  ;;  %v667_v22 = vsel %vm28_vm0, %v630_v60, 2147483648 }
 0xfd8   :  { %657 = vmax.xlane.f32.xlu0 %v656_v20  ;;  %v669_v56 = vshra.s32 %v667_v22, 16  ;;  %v668_v18 = vand.u32 65535, %v667_v22 }
 0xfda   :  { %v671_v5 = vcvt.s32.f32 %v669_v56  ;;  %v670_v1 = vcvt.s32.f32 %v668_v18 }
 0xfdc   :  { %672 = vmax.xlane.f32.xlu1 %v671_v5 }
0x1061   :  { %v658_v16 = vpop.xlane.xlu0 %657 }
0x1062   :  { %vm659_vm6 = vcmp.eq.f32.partialorder %v656_v20, %v658_v16  ;;  %v664_v61 = vcvt.f32.s32 %v658_v16 }
0x1063   :  { %v660_v4 = vsel %vm659_vm6, %v655_v11, -inf }
0x1064   :  { %661 = vmax.xlane.f32.xlu0 %v660_v4  ;;  %v665_v26 = vshll.u32 %v664_v61, 16 }
0x1065   :  { %v673_v7 = vpop.xlane.xlu1 %672 }
0x1066   :  { %vm674_vm7 = vcmp.eq.f32.partialorder %v671_v5, %v673_v7  ;;  %v679_v27 = vcvt.f32.s32 %v673_v7 }
0x1067   :  { %v675_v9 = vsel %vm674_vm7, %v670_v1, -inf }
0x1068   :  { %676 = vmax.xlane.f32.xlu1 %v675_v9  ;;  %v680_v33 = vshll.u32 %v679_v27, 16 }
0x10ed   :  { %v662_v25 = vpop.xlane.xlu0 %661 }
0x10ee   :  { %v663_v28 = vcvt.f32.s32 %v662_v25 }
0x10f0   :  { %v666_v30 = vadd.s32 %v665_v26, %v663_v28 }
0x10f1   :  { %v677_v32 = vpop.xlane.xlu1 %676 }
0x10f2   :  { %vm682_vm9 = vcmp.eq.s32.totalorder %v629_v15, %v666_v30  ;;  %v720_v34 = vrot.slane %v666_v30, %v1326_v14  ;;  %v678_v36 = vcvt.f32.s32 %v677_v32 }
0x10f3   :  { %v684_v37 = vsel %vm682_vm9, %v1293_v29, 128 }
0x10f4   :  { %v1599_v43 = vsel %vm716_vm8, %v720_v34, %v1563_v42  ;;  %v681_v44 = vadd.s32 %v680_v33, %v678_v36  ;;  %v686_v46 = vsel %vm28_vm0, %v684_v37, 2147483647 }
0x10f5   :  { %v688_v47 = vshra.s32 %v686_v46, 16  ;;  %v687_v53 = vand.u32 65535, %v686_v46 }
0x10f6   :  { %vm683_vm10 = vcmp.eq.s32.totalorder %v630_v60, %v681_v44  ;;  %v724_v48 = vrot.slane %v681_v44, %v1326_v14 }
0x10f7   :  { %v690_v49 = vcvt.s32.f32 %v688_v47  ;;  %v685_v50 = vsel %vm683_vm10, %v1293_v29, 128  ;;  %v689_v55 = vcvt.s32.f32 %v687_v53  ;;  %v1249_v53 = vmov 0  }
0x10f8   :  { %v1607_v41 = vsel %vm716_vm8, %v724_v48, %v1572_v40  ;;  %v701_v51 = vsel %vm28_vm0, %v685_v50, 2147483647  ;;  %v1247_v40 = vmov 0.0   ;;  %vm1248_vm0 = vmmov 0   ;;  %1205 = vset.pattern.permute.xlu0 %v1249_v53  ;;  %1206 = vset.pattern.permute.xlu1 %v1249_v53 }
0x10f9   :  { %691 = vmin.xlane.f32.xlu0 %v690_v49  ;;  %v703_v42 = vshra.s32 %v701_v51, 16  ;;  %v702_v39 = vand.u32 65535, %v701_v51  ;;  %1168 = vmatprep.subr.mxu0 %v1247_v40 }
0x10fa   :  { %1179 = vmatprep.subr.mxu1 %v1247_v40  ;;  %1169 = vmatpush3.msra.mxu0 %v796_v35 }
0x10fb   :  { %v705_v52 = vcvt.s32.f32 %v703_v42  ;;  %v704_v29 = vcvt.s32.f32 %v702_v39  ;;  %1170 = vmatprep.subr.mxu0 %v1247_v40  ;;  %1180 = vmatpush3.msra.mxu1 %v800_v58 }
0x10fc   :  { %1171 = vmatpush3.msra.mxu0 %v795_v57  ;;  %1181 = vmatprep.subr.mxu1 %v1247_v40 }
0x10fd   :  { %706 = vmin.xlane.f32.xlu1 %v705_v52  ;;  %1172 = vmatprep.subr.mxu0 %v1247_v40 }
0x10fe   :  { %1176 = vmatprep.mubr.msk.f32.mxu0 %vm1248_vm0, %v1247_v40  ;;  %1173 = vmatpush3.msra.mxu0 %v794_v59 }
0x10ff   :  { %1182 = vmatpush3.msra.mxu1 %v799_v62  ;;  %1174 = vmatprep.subr.mxu0 %v1247_v40 }
0x1100   :  { %1183 = vmatprep.subr.mxu1 %v1247_v40  ;;  %1175 = vmatpush3.msra.mxu0 %v793_v63 }
0x1101   :  { %1187 = vmatprep.mubr.msk.f32.mxu1 %vm1248_vm0, %v1247_v40  ;;  %1184 = vmatpush3.msra.mxu1 %v798_v0  ;;  %vm737_vm0 = vcmp.ge.s32.totalorder %v1599_v43, 0 }
0x1102   :  { %1185 = vmatprep.subr.mxu1 %v1247_v40 }
0x1103   :  { %1186 = vmatpush3.msra.mxu1 %v797_v2 }
0x1182   :  { %v692_v54 = vpop.xlane.xlu0 %691 }
0x1183   :  { %vm693_vm11 = vcmp.eq.f32.partialorder %v690_v49, %v692_v54  ;;  %v698_v3 = vcvt.f32.s32 %v692_v54 }
0x1184   :  { %v694_v45 = vsel %vm693_vm11, %v689_v55, inf }
0x1185   :  { %695 = vmin.xlane.f32.xlu0 %v694_v45  ;;  %v699_v15 = vshll.u32 %v698_v3, 16 }
0x1186   :  { %v707_v31 = vpop.xlane.xlu1 %706 }
0x1187   :  { %vm708_vm12 = vcmp.eq.f32.partialorder %v705_v52, %v707_v31  ;;  %v713_v17 = vcvt.f32.s32 %v707_v31 }
0x1188   :  { %v709_v38 = vsel %vm708_vm12, %v704_v29, inf }
0x1189   :  { %710 = vmin.xlane.f32.xlu1 %v709_v38  ;;  %v714_v20 = vshll.u32 %v713_v17, 16 }
0x120e   :  { %v696_v6 = vpop.xlane.xlu0 %695 }
0x120f   :  { %v697_v10 = vcvt.f32.s32 %v696_v6 }
0x1211   :  { %v700_v19 = vadd.s32 %v699_v15, %v697_v10 }
0x1212   :  { %v711_v12 = vpop.xlane.xlu1 %710 }
0x1213   :  { %v730_v60 = vrot.slane %v700_v19, %v1326_v14  ;;  %v712_v22 = vcvt.f32.s32 %v711_v12 }
0x1215   :  { %v735_v56 = vsel %vm716_vm8, %v730_v60, %v1581_v8  ;;  %v715_v5 = vadd.s32 %v714_v20, %v712_v22 }
0x1216   :  { %v757_v24 = vcvt.s32.f32 %v735_v56 }
0x1217   :  { %v734_v16 = vrot.slane %v715_v5, %v1326_v14 }
0x1218   :  { %v759_v11 = vadd.f32 0.5, %v757_v24 }
0x1219   :  { %v736_v18 = vsel %vm716_vm8, %v734_v16, %v1590_v13 }
0x121a   :  { %v761_v4 = vmul.f32 0.25, %v759_v11  ;;  %v758_v7 = vcvt.s32.f32 %v736_v18 }
0x121c   :  { %v763_v1 = vfloor.f32 %v761_v4  ;;  %v760_v9 = vadd.f32 0.5, %v758_v7  ;;  %v1252_v4 = vmov 1  }
0x121e   :  { %v1190_v61 = vtrunc.f32 %v763_v1  ;;  %v762_v25 = vmul.f32 0.25, %v760_v9 }
0x1220   :  { %v1191_v26 = vcvt.f32.s32 %v1190_v61  ;;  %v764_v27 = vfloor.f32 %v762_v25 }
0x1222   :  { %v1192_v28 = vtrunc.f32 %v764_v27  ;;  %v767_v30 = vmul.u32 4, %v1191_v26  ;;  %v777_v33 = vadd.s32 1, %v1191_v26  ;;  %v1150_v14 = vadd.s32 4294967295, %v1191_v26 }
0x1224   :  { %v1193_v8 = vcvt.f32.s32 %v1192_v28  ;;  %v769_v32 = vsub.s32 %v735_v56, %v767_v30 }
0x1226   :  { %vm771_vm13 = vcmp.lt.s32.totalorder %v769_v32, 0  ;;  %vm775_vm14 = vcmp.ge.s32.totalorder %v769_v32, 4  ;;  %v768_v34 = vmul.u32 4, %v1193_v8  ;;  %v778_v44 = vadd.s32 1, %v1193_v8 }
0x1227   :  { %v779_v36 = vsel %vm775_vm14, %v777_v33, %v1191_v26  ;;  %v1151_v47 = vadd.s32 4294967295, %v1193_v8  ;;  %v739_v26 = vxor.u32 2147483647, %v1599_v43 }
0x1228   :  { %v781_v21 = vsel %vm771_vm13, %v1150_v14, %v779_v36  ;;  %v770_v13 = vsub.s32 %v736_v18, %v768_v34  ;;  %v740_v14 = vxor.u32 2147483647, %v1607_v41 }
0x1229   :  { %v783_v37 = vmul.u32 4, %v781_v21  ;;  %vm787_vm1 = vcmp.eq.s32.totalorder %v781_v21, %v1289_v23  ;;  %v741_v30 = vsel %vm737_vm0, %v1599_v43, %v739_v26 }
0x122a   :  { %v1152_v46 = vsel %vm787_vm1, 1.0, %v1247_v40  ;;  %vm772_vm2 = vcmp.lt.s32.totalorder %v770_v13, 0  ;;  %vm776_vm3 = vcmp.ge.s32.totalorder %v770_v13, 4 }
0x122b   :  { %v1654_v48 = vsub.s32 %v735_v56, %v783_v37  ;;  %1177 = vmatmul.mubr.msk.f32.vlgmr.msra.gmra.mxu0 %vm801_vm15, %v1152_v46  ;;  %v780_v49 = vsel %vm776_vm3, %v778_v44, %v1193_v8  ;;  %v1148_v8 = vmul.f32 -1.442695, %v741_v30 }
0x122c   :  { %v782_v50 = vsel %vm772_vm2, %v1151_v47, %v780_v49 }
0x122d   :  { %v784_v51 = vmul.u32 4, %v782_v50  ;;  %vm788_vm4 = vcmp.eq.s32.totalorder %v782_v50, %v1289_v23  ;;  %1217 = vpow2.f32 %v1148_v8 }
0x122e   :  { %v1153_v42 = vsel %vm788_vm4, 1.0, %v1247_v40 }
0x122f   :  { %v1659_v52 = vsub.s32 %v736_v18, %v784_v51  ;;  %1188 = vmatmul.mubr.msk.f32.vlgmr.msra.gmra.mxu1 %vm801_vm15, %v1153_v42  ;;  %v1253_v42 = vmov 60.0  }
0x123a   :  { %v1218_v50 = vpop.eup %1217 }
0x123b   :  { %v751_v51 = vadd.f32 1.0, %v1218_v50 }
0x12eb   :  { %v1664_v54 = vpop.f32.mrf.mxu0 }
0x12ec   :  { %v948_v55 = vmul.f32 0.5, %v1664_v54 }
0x12ed   :  { %v1178_v39 = vpop.f32.mrf.mxu0 }
0x12ee   :  { %952 = vrot.lane.b32.xlu0 %v948_v55, %s1250_s1 }
0x12ef   :  { %v1667_v45 = vpop.f32.mrf.mxu1 }
0x12f0   :  { %v949_v31 = vmul.f32 0.5, %v1667_v45 }
0x12f1   :  { %v1189_v29 = vpop.f32.mrf.mxu1 }
0x12f2   :  { %954 = vrot.lane.b32.xlu1 %v949_v31, %s1250_s1 }
0x1360   :  { %v953_v38 = vpop.permute.xlu0 %952 }
0x1361   :  { %v958_v35 = vsub.f32 %v1664_v54, %v953_v38  ;;  %v968_v57 = vadd.f32 %v953_v38, %v1664_v54  ;;  %v1254_v38 = vmov -30.0  }
0x1363   :  { %v964_v58 = vmul.f32 60.0, %v958_v35  ;;  %v974_v59 = vmul.f32 60.0, %v968_v57  ;;  %v960_v22 = vmul.f32 30.0, %v958_v35  ;;  %v970_v1 = vmul.f32 30.0, %v968_v57 }
0x1364   :  { %v955_v62 = vpop.permute.xlu1 %954 }
0x1365   :  { %v966_v63 = vadd.f32 -30.0, %v964_v58  ;;  %v976_v0 = vadd.f32 -30.0, %v974_v59  ;;  %v959_v2 = vsub.f32 %v1667_v45, %v955_v62  ;;  %v969_v3 = vadd.f32 %v955_v62, %v1667_v45 }
0x1366   :  { %v962_v24 = vadd.f32 -15.0, %v960_v22  ;;  %v972_v61 = vadd.f32 -15.0, %v970_v1 }
0x1367   :  { %v965_v6 = vmul.f32 60.0, %v959_v2  ;;  %v975_v15 = vmul.f32 60.0, %v969_v3  ;;  %vm1061_vm5 = vcmp.ge.f32.partialorder %v976_v0, -35.0  ;;  %vm1045_vm6 = vcmp.ge.f32.partialorder %v966_v63, -35.0 }
0x1368   :  { %v1063_v10 = vsel %vm1061_vm5, 1, %v1249_v53  ;;  %v1047_v19 = vsel %vm1045_vm6, 1, %v1249_v53  ;;  %vm1077_vm7 = vcmp.le.f32.partialorder %v966_v63, 35.0  ;;  %vm1093_vm9 = vcmp.le.f32.partialorder %v976_v0, 35.0 }
0x1369   :  { %v967_v17 = vadd.f32 -30.0, %v965_v6  ;;  %v977_v12 = vadd.f32 -30.0, %v975_v15  ;;  %1065 = vrot.lane.b32.xlu0 %v1063_v10, %s1251_s28  ;;  %1049 = vrot.lane.b32.xlu1 %v1047_v19, %s1251_s28  ;;  %v1079_v60 = vsel %vm1077_vm7, 1, %v1249_v53  ;;  %v1095_v56 = vsel %vm1093_vm9, 1, %v1249_v53 }
0x136a   :  { %v961_v11 = vmul.f32 30.0, %v959_v2  ;;  %v971_v9 = vmul.f32 30.0, %v969_v3  ;;  %vm1043_vm13 = vcmp.ge.f32.partialorder %v962_v24, -20.0  ;;  %vm1057_vm15 = vcmp.ge.f32.partialorder %v972_v61, -20.0 }
0x136b   :  { %vm1046_vm8 = vcmp.ge.f32.partialorder %v967_v17, -35.0  ;;  %vm1062_vm10 = vcmp.ge.f32.partialorder %v977_v12, -35.0  ;;  %vm1078_vm11 = vcmp.le.f32.partialorder %v967_v17, 35.0  ;;  %vm1094_vm12 = vcmp.le.f32.partialorder %v977_v12, 35.0 }
0x136c   :  { %v1048_v20 = vsel %vm1046_vm8, 1, %v1249_v53  ;;  %v1064_v5 = vsel %vm1062_vm10, 1, %v1249_v53  ;;  %v1080_v16 = vsel %vm1078_vm11, 1, %v1249_v53  ;;  %v1096_v18 = vsel %vm1094_vm12, 1, %v1249_v53 }
0x136d   :  { %1081 = vrot.lane.b32.xlu0 %v1079_v60, %s1251_s28  ;;  %1051 = vrot.lane.b32.xlu1 %v1048_v20, %s1251_s28  ;;  %v963_v7 = vadd.f32 -15.0, %v961_v11  ;;  %v973_v25 = vadd.f32 -15.0, %v971_v9  ;;  %vm1073_vm5 = vcmp.le.f32.partialorder %v962_v24, 20.0  ;;  %vm738_vm9 = vcmp.ge.s32.totalorder %v1607_v41, 0 }
0x136e   :  { %vm1089_vm0 = vcmp.le.f32.partialorder %v972_v61, 20.0  ;;  %v742_v36 = vsel %vm738_vm9, %v1607_v41, %v740_v14  ;;  %v978_v41 = vand.u32 1, %v1289_v23  ;;  %v1113_v19 = vcvt.s32.f32 %v1654_v48 }
0x136f   :  { %vm1044_vm11 = vcmp.ge.f32.partialorder %v963_v7, -20.0  ;;  %v1149_v13 = vmul.f32 -1.442695, %v742_v36 }
0x1371   :  { %1097 = vrot.lane.b32.xlu0 %v1095_v56, %s1251_s28  ;;  %1067 = vrot.lane.b32.xlu1 %v1064_v5, %s1251_s28  ;;  %1219 = vpow2.f32 %v1149_v13 }
0x1372   :  { %1221 = vrcp.f32 %v751_v51 }
0x1375   :  { %994 = vperm.xlu0 %1205, %v962_v24   ;;  %1083 = vrot.lane.b32.xlu1 %v1080_v16, %s1251_s28 }
0x1379   :  { %1208 = vset.pattern.permute.xlu0 %v1252_v4  ;;  %1099 = vrot.lane.b32.xlu1 %v1096_v18, %s1251_s28  ;;  %v1114_v18 = vcvt.s32.f32 %v1659_v52 }
0x137a   :  { %1012 = vperm.xlu0 %1208, %v967_v17  }
0x137d   :  { %999 = vperm.xlu1 %1206, %v963_v7  }
0x137e   :  { %1033 = vperm.xlu0 %1208, %v976_v0   ;;  %v1220_v39 = vpop.eup %1219 }
0x137f   :  { %v1222_v10 = vpop.eup %1221 }
0x1381   :  { %1207 = vset.pattern.permute.xlu1 %v1252_v4 }
0x1382   :  { %1007 = vperm.xlu1 %1207, %v966_v63   ;;  %1211 = vset.pattern.permute.xlu0 %v1249_v53 }
0x1386   :  { %1209 = vset.pattern.permute.xlu1 %v1249_v53 }
0x1387   :  { %1020 = vperm.xlu1 %1209, %v972_v61  }
0x138b   :  { %1025 = vperm.xlu1 %1209, %v973_v25  }
0x138f   :  { %1210 = vset.pattern.permute.xlu1 %v1252_v4 }
0x1390   :  { %1038 = vperm.xlu1 %1210, %v977_v12  }
0x13db   :  { %v1066_v27 = vpop.permute.xlu0 %1065  ;;  %v1050_v28 = vpop.permute.xlu1 %1049 }
0x13dc   :  { %vm1053_vm14 = vcmp.ne.s32.totalorder %v1050_v28, 0  ;;  %vm1069_vm2 = vcmp.ne.s32.totalorder %v1066_v27, 0 }
0x13dd   :  { %vm1055_vm1 = vmand %vm1043_vm13, %vm1053_vm14  ;;  %vm1058_vm14 = vcmp.ge.f32.partialorder %v973_v25, -20.0 }
0x13de   :  { %vm1059_vm3 = vmand %vm1055_vm1, %vm1057_vm15 }
0x13df   :  { %v1082_v32 = vpop.permute.xlu0 %1081  ;;  %vm1071_vm4 = vmand %vm1059_vm3, %vm1069_vm2  ;;  %v1052_v33 = vpop.permute.xlu1 %1051  ;;  %vm1074_vm3 = vcmp.le.f32.partialorder %v963_v7, 20.0 }
0x13e0   :  { %vm1075_vm6 = vmand %vm1071_vm4, %vm1073_vm5  ;;  %vm1085_vm7 = vcmp.ne.s32.totalorder %v1082_v32, 0  ;;  %vm1054_vm8 = vcmp.ne.s32.totalorder %v1052_v33, 0 }
0x13e1   :  { %vm1087_vm10 = vmand %vm1075_vm6, %vm1085_vm7 }
0x13e2   :  { %vm1056_vm12 = vmand %vm1044_vm11, %vm1054_vm8  ;;  %vm1090_vm8 = vcmp.le.f32.partialorder %v973_v25, 20.0 }
0x13e3   :  { %vm1689_vm13 = vmand %vm1087_vm10, %vm1089_vm0  ;;  %v1068_v34 = vpop.permute.xlu1 %1067  ;;  %v1098_v21 = vpop.permute.xlu0 %1097 }
0x13e4   :  { %vm1060_vm15 = vmand %vm1056_vm12, %vm1058_vm14  ;;  %vm1070_vm1 = vcmp.ne.s32.totalorder %v1068_v34, 0  ;;  %vm1101_vm5 = vcmp.ne.s32.totalorder %v1098_v21, 0  ;;  %vm979_vm12 = vcmp.eq.s32.totalorder %v978_v41, 0  ;;  %vm981_vm14 = vcmp.lt.s32.totalorder %v1289_v23, 24 }
0x13e5   :  { %vm1072_vm2 = vmand %vm1060_vm15, %vm1070_vm1  ;;  %v983_v53 = vsel %vm979_vm12, 30.0, %v1253_v42  ;;  %v986_v35 = vsel %vm979_vm12, -15.0, %v1254_v38  ;;  %vm991_vm1 = vcmp.eq.s32.totalorder %v1289_v23, 0 }
0x13e6   :  { %vm1076_vm4 = vmand %vm1072_vm2, %vm1074_vm3  ;;  %v984_v31 = vmul.f32 %v983_v53, %v1664_v54  ;;  %v985_v63 = vmul.f32 %v983_v53, %v1667_v45  ;;  %vm1017_vm2 = vcmp.eq.s32.totalorder %v1289_v23, 2  ;;  %vm1004_vm3 = vcmp.eq.s32.totalorder %v1289_v23, 1 }
0x13e7   :  { %v1084_v37 = vpop.permute.xlu1 %1083  ;;  %vm1103_vm11 = vmand %vm1689_vm13, %vm1101_vm5  ;;  %vm980_vm13 = vcmp.ge.s32.totalorder %v1289_v23, 8  ;;  %vm1109_vm5 = vcmp.eq.s32.totalorder %v1289_v23, 4 }
0x13e8   :  { %vm1086_vm6 = vcmp.ne.s32.totalorder %v1084_v37, 0  ;;  %v1156_v46 = vsel %vm1103_vm11, 1.0, %v1247_v40  ;;  %v987_v57 = vadd.f32 %v986_v35, %v984_v31  ;;  %vm1702_vm15 = vmand %vm980_vm13, %vm981_vm14  ;;  %v988_v3 = vadd.f32 %v986_v35, %v985_v63 }
0x13e9   :  { %vm1088_vm7 = vmand %vm1076_vm4, %vm1086_vm6  ;;  %vm1030_vm4 = vcmp.eq.s32.totalorder %v1289_v23, 3  ;;  %vm1112_vm6 = vcmp.eq.s32.totalorder %v1289_v23, 5 }
0x13ea   :  { %vm1092_vm10 = vmand %vm1088_vm7, %vm1090_vm8  ;;  %v989_v0 = vsel %vm1702_vm15, %v987_v57, %v1664_v54  ;;  %v990_v60 = vsel %vm1702_vm15, %v988_v3, %v1667_v45  ;;  %vm1117_vm7 = vcmp.eq.s32.totalorder %v1289_v23, 6 }
0x13eb   :  { %v1100_v44 = vpop.permute.xlu1 %1099 }
0x13ec   :  { %vm1102_vm0 = vcmp.ne.s32.totalorder %v1100_v44, 0 }
0x13ed   :  { %vm1104_vm9 = vmand %vm1092_vm10, %vm1102_vm0 }
0x13ee   :  { %v1157_v47 = vsel %vm1104_vm9, 1.0, %v1247_v40  ;;  %v752_v40 = vadd.f32 1.0, %v1220_v39 }
0x13ef   :  { %v1212_v49 = vpack.i.bf16 %v1157_v47, %v1156_v46 }
0x13f0   :  { %v995_v55 = vpop.permute.xlu0 %994  ;;  %1223 = vrcp.f32 %v752_v40 }
0x13f1   :  { %1213 = vperm.xlu0 %1211, %v1212_v49   ;;  %v1002_v2 = vsel %vm991_vm1, %v995_v55, %v989_v0 }
0x13f5   :  { %v1013_v59 = vpop.permute.xlu0 %1012 }
0x13f8   :  { %v1000_v29 = vpop.permute.xlu1 %999 }
0x13f9   :  { %v1034_v17 = vpop.permute.xlu0 %1033  ;;  %v1003_v5 = vsel %vm991_vm1, %v1000_v29, %v990_v60 }
0x13fa   :  { %v1016_v48 = vsel %vm1004_vm3, %v1013_v59, %v1003_v5 }
0x13fd   :  { %v1008_v62 = vpop.permute.xlu1 %1007  ;;  %v1224_v11 = vpop.eup %1223 }
0x13fe   :  { %v1015_v6 = vsel %vm1004_vm3, %v1008_v62, %v1002_v2 }
0x1402   :  { %v1021_v15 = vpop.permute.xlu1 %1020 }
0x1403   :  { %v1028_v54 = vsel %vm1017_vm2, %v1021_v15, %v1015_v6 }
0x1404   :  { %v1041_v12 = vsel %vm1030_vm4, %v1034_v17, %v1028_v54 }
0x1405   :  { %v1110_v20 = vsel %vm1109_vm5, %v1222_v10, %v1041_v12 }
0x1406   :  { %v1026_v22 = vpop.permute.xlu1 %1025  ;;  %v1115_v56 = vsel %vm1112_vm6, %v1113_v19, %v1110_v20 }
0x1407   :  { %v1029_v24 = vsel %vm1017_vm2, %v1026_v22, %v1016_v48 }
0x140b   :  { %v1039_v16 = vpop.permute.xlu1 %1038 }
0x140c   :  { %v1042_v45 = vsel %vm1030_vm4, %v1039_v16, %v1029_v24 }
0x140d   :  { %v1111_v4 = vsel %vm1109_vm5, %v1224_v11, %v1042_v45 }
0x140e   :  { %v1116_v7 = vsel %vm1112_vm6, %v1114_v18, %v1111_v4 }
0x146c   :  { %v1214_v1 = vpop.permute.xlu0 %1213 }
0x146d   :  { %v1216_v9 = vunpack.i.h.bf16 %v1214_v1  ;;  %v1215_v61 = vunpack.i.l.bf16 %v1214_v1 }
0x146f   :  { %v1128_v25 = vsel %vm1117_vm7, %v1215_v61, %v1115_v56  ;;  %v1129_v26 = vsel %vm1117_vm7, %v1216_v9, %v1116_v7 }
0x1470   :  { %1130 = vst [vmem:[#allocation2] sm:$0xff] %v1128_v25  ;;  %1131 = vst [vmem:[#allocation2 + $0x8] sm:$0xff] %v1129_v26 }
0x1471   :  { %1236 = shalt.err (!%p1233_p4)
}
0x1472   :  { %s1256_s4 = smov 128   ;;  %s1257_s5 = smov 8  }
0x1473   :  { %1143 = dma.vmem_to_hbm [thread:$0]  %s1138_s30, 256, %s1751_s2, [#allocation3], %s1256_s4, %s1256_s4, %s1257_s5  }
0x1474   :  { %1245 = dma.done.wait [#allocation3], 256  }
0x1475   :  { %1246 = vsyncadd [#allocation3], 4294967040 }
0x1476   :  { %1147 = vsyncpa [#allocation3], 1 }

</bundles_post_ra>
